<compile_context>
chip_gen: v7x
topology: tpu7x:2x2x1
jax: 0.10.0
libtpu: 0.0.40
codegen_flags: <defaults>
</compile_context>

<pallas_src>
import functools
import math

import jax
import jax.numpy as jnp
from jax import lax
from jax.experimental import pallas as pl
from jax.experimental.pallas import tpu as pltpu


# ----------------------------- fused Pallas kernel -----------------------------

def _mha_fused_kernel(x_ref, c_ref, wq_ref, bq_ref, wkv_ref, bkv_ref,
                      wo_ref, bo_ref, tq_ref, tk_ref, o_ref,
                      *, n_heads, head_dim, half, b_blk, t_t, t_s):
    """One lane block (b_blk batch elements, flattened on lanes) per grid step."""
    C = wq_ref.shape[0]
    H, D = n_heads, head_dim
    mxu_dtype = wq_ref.dtype            # bf16 or f32 operands; accumulation is f32

    x = x_ref[...]                      # (C, b_blk*t_t)   query-side slab
    cc = c_ref[...]                     # (C, b_blk*t_s)   key/value-side slab

    # 1x1-Conv1d projections = channel-contraction matmuls with lane-dense N.
    # Biases stay f32 and ride the f32 accumulators (hoisted, outside all loops).
    q = jnp.dot(wq_ref[...], x, preferred_element_type=jnp.float32) + bq_ref[...]
    kv = jnp.dot(wkv_ref[...], cc, preferred_element_type=jnp.float32) + bkv_ref[...]
    k = kv[:C]                          # (C, b_blk*t_s)  sublane-aligned split
    v = kv[C:]

    # Packed RoPE tables (q side pre-scaled by 1/sqrt(D)):
    #   [0] coeff of z[d] (cos; 1 on pass-through dims)
    #   [1] coeff of z[d-half]  (nonzero only for d in [half, d_rope) of each head)
    #   [2] coeff of z[d+half]  (nonzero only for d in [0, half) of each head)
    cos_q, sp_q, sn_q = tq_ref[0], tq_ref[1], tq_ref[2]      # (C, b_blk*t_t)
    cos_k, sp_k, sn_k = tk_ref[0], tk_ref[1], tk_ref[2]      # (C, b_blk*t_s)

    def rope(z, cosf, sinp, sinn):
        # Whole-tensor sublane rolls: 2 XLU rolls per side total (not 2 per head).
        # Rows where the roll crosses a head boundary have a zero sin coefficient,
        # so this matches per-head rotation exactly.
        return (z * cosf
                + pltpu.roll(z, shift=half, axis=0) * sinp        # -> z[d - half]
                + pltpu.roll(z, shift=C - half, axis=0) * sinn)   # -> z[d + half]

    q = rope(q, cos_q, sp_q, sn_q).astype(mxu_dtype)   # pre-scaled by 1/sqrt(D)
    k = rope(k, cos_k, sp_k, sn_k).astype(mxu_dtype)
    v = v.astype(mxu_dtype)

    # Head split 'b (h d) t' -> (H, D, L): pure major-dim split, free since D % 8 == 0.
    q3 = q.reshape(H, D, b_blk * t_t)
    k3 = k.reshape(H, D, b_blk * t_s)
    v3 = v.reshape(H, D, b_blk * t_s)

    outs = []
    for b in range(b_blk):              # small static loop over the block's batch elems
        qb = q3[:, :, b * t_t:(b + 1) * t_t]         # (H, D, t_t)
        kb = k3[:, :, b * t_s:(b + 1) * t_s]         # (H, D, t_s)
        vb = v3[:, :, b * t_s:(b + 1) * t_s]         # (H, D, t_s)

        # Transposed scores (H, t_s, t_t), head-batched: moving operand qb is in
        # MXU-standard orientation and softmax reductions run along sublanes.
        s = lax.dot_general(kb, qb, (((1,), (1,)), ((0,), (0,))),
                            preferred_element_type=jnp.float32)   # (H, t_s, t_t)
        m = jnp.max(s, axis=1, keepdims=True)                     # (H, 1, t_t)
        p = jnp.exp(s - m)
        denom = jnp.sum(p, axis=1, keepdims=True)                 # (H, 1, t_t)

        # PV is a plain A@B (vb lanes contract with p sublanes) -> no hidden vxpose.
        o = lax.dot_general(vb, p.astype(mxu_dtype),
                            (((2,), (1,)), ((0,), (0,))),
                            preferred_element_type=jnp.float32)   # (H, D, t_t)
        # Normalize AFTER the PV matmul: D*t_t multiplies instead of t_s*t_t.
        o = o * pl.reciprocal(denom, approx=True)
        outs.append(o.reshape(C, t_t))               # free (h d) merge -> channel layout

    attn = outs[0] if b_blk == 1 else jnp.concatenate(outs, axis=1)  # (C, b_blk*t_t)

    out = jnp.dot(wo_ref[...], attn.astype(mxu_dtype),
                  preferred_element_type=jnp.float32) + bo_ref[...]
    o_ref[...] = out.astype(o_ref.dtype)             # lane-dense store


# ----------------------------- RoPE table construction -----------------------------

def _rope_tables(T, D, d_rope, scale, base=10000):
    """Packed (3, D, T) tables: [cos, coeff-of-z[d-half], coeff-of-z[d+half]]."""
    half = d_rope // 2
    theta = 1.0 / (base ** (jnp.arange(0, d_rope, 2, dtype=jnp.float32) / d_rope))
    pos = jnp.arange(T, dtype=jnp.float32)
    ang = pos[:, None] * theta[None, :]                       # (T, half)
    ang2 = jnp.concatenate([ang, ang], axis=1)                # (T, d_rope)
    npass = D - d_rope
    cos_t = jnp.concatenate(
        [jnp.cos(ang2), jnp.ones((T, npass), jnp.float32)], axis=1)       # (T, D)
    sin_t = jnp.sin(ang2)                                                 # (T, d_rope)
    z_half = jnp.zeros((T, half), jnp.float32)
    z_pass = jnp.zeros((T, npass), jnp.float32)
    # destination d in [half, d_rope): + sin * z[d - half]
    sinp_t = jnp.concatenate([z_half, sin_t[:, half:], z_pass], axis=1)   # (T, D)
    # destination d in [0, half):      - sin * z[d + half]
    sinn_t = jnp.concatenate([-sin_t[:, :half], z_half, z_pass], axis=1)  # (T, D)
    tbl = jnp.stack([cos_t, sinp_t, sinn_t], axis=0)                      # (3, T, D)
    return (scale * tbl).transpose(0, 2, 1)                               # (3, D, T)


# ----------------------------- VMEM budget (advisory) -----------------------------

def _vmem_limit_bytes(C, C_out, lq, ls, n_heads, t_t, t_s, act_itemsize):
    """Rough scoped-VMEM budget for one grid step of the fused kernel."""
    acts = 2 * (C * lq + C * ls + C_out * lq) * act_itemsize         # double-buffered blocks
    weights = (3 * C * C + C_out * C) * act_itemsize + (3 * C + C_out) * 4
    tables = 3 * C * (lq + ls) * 4
    # f32 intermediates: q/kv/attn slabs + one batch element's (H, t_s, t_t) scores/probs.
    interm = 4 * (4 * C * lq + 3 * C * ls + 2 * n_heads * t_s * t_t)
    est = acts + weights + tables + interm
    # Floor at 32 MiB (>= default scoped limit on every generation), cap at v7x's
    # 64 MiB physical VMEM.  Re-derive once the flash-KV tiling lands.
    return int(min(64 * 2 ** 20, max(32 * 2 ** 20, 2 * est)))


# ----------------------------- module wrapper -----------------------------

def init_params(key, channels, out_channels):
    """Deterministic synthetic init (xavier-uniform-like), mirroring the torch shapes."""
    ks = jax.random.split(key, 8)

    def xavier(k, c_out, c_in):
        lim = math.sqrt(6.0 / (c_in + c_out))
        return jax.random.uniform(k, (c_out, c_in), jnp.float32, -lim, lim)

    def bias(k, c_out, c_in):
        lim = 1.0 / math.sqrt(c_in)
        return jax.random.uniform(k, (c_out,), jnp.float32, -lim, lim)

    return {
        "wq": xavier(ks[0], channels, channels), "bq": bias(ks[1], channels, channels),
        "wk": xavier(ks[2], channels, channels), "bk": bias(ks[3], channels, channels),
        "wv": xavier(ks[4], channels, channels), "bv": bias(ks[5], channels, channels),
        "wo": xavier(ks[6], out_channels, channels), "bo": bias(ks[7], out_channels, channels),
    }


@functools.partial(jax.jit, static_argnames=("n_heads", "mxu_dtype", "batch_block"))
def multi_head_attention_forward(params, x, c, n_heads, mxu_dtype=jnp.float32,
                                 batch_block=None):
    """x: [B, channels, T_t], c: [B, channels, T_s] -> [B, out_channels, T_t]."""
    B, C, T_t = x.shape
    T_s = c.shape[2]
    assert C % n_heads == 0
    D = C // n_heads
    assert D % 8 == 0, "head_dim must be a multiple of 8 (sublane tile) for free splits/rolls"
    d_rope = int(D * 0.5)
    assert d_rope % 2 == 0 and 0 < d_rope <= D, "RoPE dim must be a positive even number"
    half = d_rope // 2
    scale = 1.0 / math.sqrt(D)

    if batch_block is None:
        batch_block = B                      # demo: whole batch in one lane block
    assert B % batch_block == 0
    n_blocks = B // batch_block
    lq, ls = batch_block * T_t, batch_block * T_s
    if n_blocks > 1:
        assert lq % 128 == 0 and ls % 128 == 0, (
            "with multiple batch blocks, batch_block*T must be a multiple of 128")

    # Weight-side prep (done once at load time in real usage): fuse k/v, cast for MXU.
    wq = params["wq"].astype(mxu_dtype)
    wkv = jnp.concatenate([params["wk"], params["wv"]], axis=0).astype(mxu_dtype)   # (2C, C)
    wo = params["wo"].astype(mxu_dtype)
    bq = params["bq"].reshape(C, 1)                       # biases stay f32 (added to f32 acc)
    bkv = jnp.concatenate([params["bk"], params["bv"]], axis=0).reshape(2 * C, 1)
    bo = params["bo"].reshape(-1, 1)
    C_out = wo.shape[0]

    # Lane-flatten batch: (B, C, T) -> (C, B*T); lanes ordered (b, t).
    x2 = x.transpose(1, 0, 2).reshape(C, B * T_t).astype(mxu_dtype)
    c2 = c.transpose(1, 0, 2).reshape(C, B * T_s).astype(mxu_dtype)

    # Packed RoPE tables for one lane block, tiled over heads (sublanes) and the
    # block's batch elements (lanes); every grid block sees identical positions.
    tq = jnp.tile(_rope_tables(T_t, D, d_rope, scale), (1, n_heads, batch_block))   # (3, C, lq)
    tk = jnp.tile(_rope_tables(T_s, D, d_rope, 1.0), (1, n_heads, batch_block))     # (3, C, ls)

    kernel = functools.partial(_mha_fused_kernel, n_heads=n_heads, head_dim=D,
                               half=half, b_blk=batch_block, t_t=T_t, t_s=T_s)

    out_flat = pl.pallas_call(
        kernel,
        out_shape=jax.ShapeDtypeStruct((C_out, B * T_t), x.dtype),
        grid_spec=pltpu.PrefetchScalarGridSpec(
            num_scalar_prefetch=0,
            grid=(n_blocks,),
            in_specs=[
                pl.BlockSpec((C, lq), lambda i: (0, i)),          # x slab
                pl.BlockSpec((C, ls), lambda i: (0, i)),          # c slab
                pl.BlockSpec((C, C), lambda i: (0, 0)),           # wq
                pl.BlockSpec((C, 1), lambda i: (0, 0)),           # bq
                pl.BlockSpec((2 * C, C), lambda i: (0, 0)),       # wkv (fused k|v)
                pl.BlockSpec((2 * C, 1), lambda i: (0, 0)),       # bkv
                pl.BlockSpec((C_out, C), lambda i: (0, 0)),       # wo
                pl.BlockSpec((C_out, 1), lambda i: (0, 0)),       # bo
                pl.BlockSpec((3, C, lq), lambda i: (0, 0, 0)),    # q-side RoPE tables
                pl.BlockSpec((3, C, ls), lambda i: (0, 0, 0)),    # k-side RoPE tables
            ],
            out_specs=pl.BlockSpec((C_out, lq), lambda i: (0, i)),
        ),
        compiler_params=pltpu.CompilerParams(
            dimension_semantics=("parallel",),    # independent lane blocks (v7x megacore)
            vmem_limit_bytes=_vmem_limit_bytes(C, C_out, lq, ls, n_heads, T_t, T_s,
                                               jnp.dtype(mxu_dtype).itemsize),
        ),
    )(x2, c2, wq, bq, wkv, bkv, wo, bo, tq, tk)

    # (C_out, B*T_t) -> (B, C_out, T_t)
    return out_flat.reshape(C_out, B, T_t).transpose(1, 0, 2)


# ----------------------------- pure-JAX reference -----------------------------

def reference_forward(params, x, c, n_heads):
    def conv(z, w, b):
        return jnp.einsum("oc,bct->bot", w, z) + b[None, :, None]

    q = conv(x, params["wq"], params["bq"])
    k = conv(c, params["wk"], params["bk"])
    v = conv(c, params["wv"], params["bv"])
    B, C, T_t = q.shape
    D = C // n_heads
    d_rope = int(D * 0.5)
    half = d_rope // 2

    def to_heads(z):  # b (h d) t -> b h t d
        return z.reshape(B, n_heads, D, z.shape[-1]).transpose(0, 1, 3, 2)

    def rope(z):      # z: (B, H, T, D)
        T = z.shape[2]
        theta = 1.0 / (10000 ** (jnp.arange(0, d_rope, 2, dtype=jnp.float32) / d_rope))
        ang = jnp.arange(T, dtype=jnp.float32)[:, None] * theta[None, :]
        ang2 = jnp.concatenate([ang, ang], axis=1)
        cos, sin = jnp.cos(ang2)[None, None], jnp.sin(ang2)[None, None]
        zr, zp = z[..., :d_rope], z[..., d_rope:]
        neg = jnp.concatenate([-zr[..., half:], zr[..., :half]], axis=-1)
        return jnp.concatenate([zr * cos + neg * sin, zp], axis=-1)

    qh, kh, vh = rope(to_heads(q)), rope(to_heads(k)), to_heads(v)
    scores = jnp.einsum("bhtd,bhsd->bhts", qh, kh) / math.sqrt(D)
    p = jax.nn.softmax(scores, axis=-1)
    out = jnp.einsum("bhts,bhsd->bhtd", p, vh)
    out = out.transpose(0, 1, 3, 2).reshape(B, C, T_t)
    return jnp.einsum("oc,bct->bot", params["wo"], out) + params["bo"][None, :, None]


# ----------------------------- main -----------------------------

if __name__ == "__main__":
    B, channels, out_channels, n_heads = 2, 32, 32, 4
    T_t, T_s = 16, 16

    key = jax.random.PRNGKey(0)
    kp, kx, kc = jax.random.split(key, 3)
    params = init_params(kp, channels, out_channels)
    x = jax.random.normal(kx, (B, channels, T_t), jnp.float32)
    c = jax.random.normal(kc, (B, channels, T_s), jnp.float32)

    y_ref = reference_forward(params, x, c, n_heads)

    # f32 MXU path: tight check against the pure-JAX reference (tolerance leaves
    # slack only for the approximate EUP reciprocal in the softmax normalization).
    y = jax.block_until_ready(multi_head_attention_forward(params, x, c, n_heads=n_heads))
    assert y.shape == (B, out_channels, T_t)
    assert jnp.allclose(y, y_ref, atol=2e-2, rtol=2e-2), "f32 kernel mismatch vs JAX reference"

    # bf16-MXU path (bf16 operands, f32 accumulation): loose smoke check; typical
    # max-abs error at these shapes is ~1e-2 against the f32 reference.
    y_bf16 = jax.block_until_ready(
        multi_head_attention_forward(params, x, c, n_heads=n_heads, mxu_dtype=jnp.bfloat16))
    assert y_bf16.shape == (B, out_channels, T_t)
    assert float(jnp.max(jnp.abs(y_bf16 - y_ref))) < 0.2, "bf16 kernel diverged from reference"

    print("KERNEL_OK")
</pallas_src>

<mosaic_0001>
module attributes {stable_mosaic.version = 11 : i64} {
  func.func @_mha_fused_kernel(%arg0: i32, %arg1: memref<32x32xf32, #tpu.memory_space<vmem>>, %arg2: memref<32x32xf32, #tpu.memory_space<vmem>>, %arg3: memref<32x32xf32, #tpu.memory_space<vmem>>, %arg4: memref<32x1xf32, #tpu.memory_space<vmem>>, %arg5: memref<64x32xf32, #tpu.memory_space<vmem>>, %arg6: memref<64x1xf32, #tpu.memory_space<vmem>>, %arg7: memref<32x32xf32, #tpu.memory_space<vmem>>, %arg8: memref<32x1xf32, #tpu.memory_space<vmem>>, %arg9: memref<3x32x32xf32, #tpu.memory_space<vmem>>, %arg10: memref<3x32x32xf32, #tpu.memory_space<vmem>>, %arg11: memref<32x32xf32, #tpu.memory_space<vmem>>) attributes {dimension_semantics = [#tpu.dimension_semantics<parallel>], iteration_bounds = array<i64: 1>, scalar_prefetch = 0 : i64, scratch_operands = 0 : i64, tpu.core_type = #tpu.core_type<tc>, window_params = [{transform_indices = @transform_0, window_bounds = array<i64: 32, 32>}, {transform_indices = @transform_1, window_bounds = array<i64: 32, 32>}, {pipeline_mode = #tpu.pipeline_mode<synchronous>, transform_indices = @transform_2, window_bounds = array<i64: 32, 32>}, {pipeline_mode = #tpu.pipeline_mode<synchronous>, transform_indices = @transform_3, window_bounds = array<i64: 32, 1>}, {pipeline_mode = #tpu.pipeline_mode<synchronous>, transform_indices = @transform_4, window_bounds = array<i64: 64, 32>}, {pipeline_mode = #tpu.pipeline_mode<synchronous>, transform_indices = @transform_5, window_bounds = array<i64: 64, 1>}, {pipeline_mode = #tpu.pipeline_mode<synchronous>, transform_indices = @transform_6, window_bounds = array<i64: 32, 32>}, {pipeline_mode = #tpu.pipeline_mode<synchronous>, transform_indices = @transform_7, window_bounds = array<i64: 32, 1>}, {pipeline_mode = #tpu.pipeline_mode<synchronous>, transform_indices = @transform_8, window_bounds = array<i64: 3, 32, 32>}, {pipeline_mode = #tpu.pipeline_mode<synchronous>, transform_indices = @transform_9, window_bounds = array<i64: 3, 32, 32>}, {transform_indices = @transform_10, window_bounds = array<i64: 32, 32>}]} {
    %c0 = arith.constant 0 : index
    %c0_0 = arith.constant 0 : index
    %0 = vector.load %arg1[%c0, %c0_0] : memref<32x32xf32, #tpu.memory_space<vmem>>, vector<32x32xf32>
    %c0_1 = arith.constant 0 : index
    %c0_2 = arith.constant 0 : index
    %1 = vector.load %arg2[%c0_1, %c0_2] : memref<32x32xf32, #tpu.memory_space<vmem>>, vector<32x32xf32>
    %c0_3 = arith.constant 0 : index
    %c0_4 = arith.constant 0 : index
    %2 = vector.load %arg3[%c0_3, %c0_4] : memref<32x32xf32, #tpu.memory_space<vmem>>, vector<32x32xf32>
    %cst = arith.constant dense<0.000000e+00> : vector<32x32xf32>
    %3 = tpu.matmul %2, %0, %cst {dimension_numbers = #tpu.dot_dimension_numbers<[1], [0], [0], [1], [0, 0, 1, 1], [], []>} : vector<32x32xf32>, vector<32x32xf32>, vector<32x32xf32> -> vector<32x32xf32>
    %c0_5 = arith.constant 0 : index
    %c0_6 = arith.constant 0 : index
    %4 = vector.load %arg4[%c0_5, %c0_6] : memref<32x1xf32, #tpu.memory_space<vmem>>, vector<32x1xf32>
    %5 = vector.broadcast %4 : vector<32x1xf32> to vector<32x32xf32>
    %6 = arith.addf %3, %5 : vector<32x32xf32>
    %c0_7 = arith.constant 0 : index
    %c0_8 = arith.constant 0 : index
    %7 = vector.load %arg5[%c0_7, %c0_8] : memref<64x32xf32, #tpu.memory_space<vmem>>, vector<64x32xf32>
    %cst_9 = arith.constant dense<0.000000e+00> : vector<64x32xf32>
    %8 = tpu.matmul %7, %1, %cst_9 {dimension_numbers = #tpu.dot_dimension_numbers<[1], [0], [0], [1], [0, 0, 1, 1], [], []>} : vector<64x32xf32>, vector<32x32xf32>, vector<64x32xf32> -> vector<64x32xf32>
    %c0_10 = arith.constant 0 : index
    %c0_11 = arith.constant 0 : index
    %9 = vector.load %arg6[%c0_10, %c0_11] : memref<64x1xf32, #tpu.memory_space<vmem>>, vector<64x1xf32>
    %10 = vector.broadcast %9 : vector<64x1xf32> to vector<64x32xf32>
    %11 = arith.addf %8, %10 : vector<64x32xf32>
    %12 = vector.extract_strided_slice %11 {offsets = [0, 0], sizes = [32, 32], strides = [1, 1]} : vector<64x32xf32> to vector<32x32xf32>
    %13 = vector.extract_strided_slice %11 {offsets = [32, 0], sizes = [32, 32], strides = [1, 1]} : vector<64x32xf32> to vector<32x32xf32>
    %c0_12 = arith.constant 0 : index
    %c0_13 = arith.constant 0 : index
    %c0_14 = arith.constant 0 : index
    %14 = vector.load %arg9[%c0_12, %c0_13, %c0_14] : memref<3x32x32xf32, #tpu.memory_space<vmem>>, vector<1x32x32xf32>
    %15 = vector.shape_cast %14 : vector<1x32x32xf32> to vector<32x32xf32>
    %c1 = arith.constant 1 : index
    %c0_15 = arith.constant 0 : index
    %c0_16 = arith.constant 0 : index
    %16 = vector.load %arg9[%c1, %c0_15, %c0_16] : memref<3x32x32xf32, #tpu.memory_space<vmem>>, vector<1x32x32xf32>
    %17 = vector.shape_cast %16 : vector<1x32x32xf32> to vector<32x32xf32>
    %c2 = arith.constant 2 : index
    %c0_17 = arith.constant 0 : index
    %c0_18 = arith.constant 0 : index
    %18 = vector.load %arg9[%c2, %c0_17, %c0_18] : memref<3x32x32xf32, #tpu.memory_space<vmem>>, vector<1x32x32xf32>
    %19 = vector.shape_cast %18 : vector<1x32x32xf32> to vector<32x32xf32>
    %c0_19 = arith.constant 0 : index
    %c0_20 = arith.constant 0 : index
    %c0_21 = arith.constant 0 : index
    %20 = vector.load %arg10[%c0_19, %c0_20, %c0_21] : memref<3x32x32xf32, #tpu.memory_space<vmem>>, vector<1x32x32xf32>
    %21 = vector.shape_cast %20 : vector<1x32x32xf32> to vector<32x32xf32>
    %c1_22 = arith.constant 1 : index
    %c0_23 = arith.constant 0 : index
    %c0_24 = arith.constant 0 : index
    %22 = vector.load %arg10[%c1_22, %c0_23, %c0_24] : memref<3x32x32xf32, #tpu.memory_space<vmem>>, vector<1x32x32xf32>
    %23 = vector.shape_cast %22 : vector<1x32x32xf32> to vector<32x32xf32>
    %c2_25 = arith.constant 2 : index
    %c0_26 = arith.constant 0 : index
    %c0_27 = arith.constant 0 : index
    %24 = vector.load %arg10[%c2_25, %c0_26, %c0_27] : memref<3x32x32xf32, #tpu.memory_space<vmem>>, vector<1x32x32xf32>
    %25 = vector.shape_cast %24 : vector<1x32x32xf32> to vector<32x32xf32>
    %26 = arith.mulf %6, %15 : vector<32x32xf32>
    %c2_i32 = arith.constant 2 : i32
    %27 = tpu.dynamic_rotate %6 by %c2_i32 dim 0 : vector<32x32xf32>, i32 -> vector<32x32xf32>
    %28 = arith.mulf %27, %17 : vector<32x32xf32>
    %29 = arith.addf %26, %28 : vector<32x32xf32>
    %c30_i32 = arith.constant 30 : i32
    %30 = tpu.dynamic_rotate %6 by %c30_i32 dim 0 : vector<32x32xf32>, i32 -> vector<32x32xf32>
    %31 = arith.mulf %30, %19 : vector<32x32xf32>
    %32 = arith.addf %29, %31 : vector<32x32xf32>
    %33 = arith.mulf %12, %21 : vector<32x32xf32>
    %c2_i32_28 = arith.constant 2 : i32
    %34 = tpu.dynamic_rotate %12 by %c2_i32_28 dim 0 : vector<32x32xf32>, i32 -> vector<32x32xf32>
    %35 = arith.mulf %34, %23 : vector<32x32xf32>
    %36 = arith.addf %33, %35 : vector<32x32xf32>
    %c30_i32_29 = arith.constant 30 : i32
    %37 = tpu.dynamic_rotate %12 by %c30_i32_29 dim 0 : vector<32x32xf32>, i32 -> vector<32x32xf32>
    %38 = arith.mulf %37, %25 : vector<32x32xf32>
    %39 = arith.addf %36, %38 : vector<32x32xf32>
    %40 = vector.shape_cast %32 : vector<32x32xf32> to vector<4x8x32xf32>
    %41 = vector.shape_cast %39 : vector<32x32xf32> to vector<4x8x32xf32>
    %42 = vector.shape_cast %13 : vector<32x32xf32> to vector<4x8x32xf32>
    %43 = vector.extract_strided_slice %40 {offsets = [0, 0, 0], sizes = [4, 8, 16], strides = [1, 1, 1]} : vector<4x8x32xf32> to vector<4x8x16xf32>
    %44 = vector.extract_strided_slice %41 {offsets = [0, 0, 0], sizes = [4, 8, 16], strides = [1, 1, 1]} : vector<4x8x32xf32> to vector<4x8x16xf32>
    %45 = vector.extract_strided_slice %42 {offsets = [0, 0, 0], sizes = [4, 8, 16], strides = [1, 1, 1]} : vector<4x8x32xf32> to vector<4x8x16xf32>
    %cst_30 = arith.constant dense<0.000000e+00> : vector<4x16x16xf32>
    %46 = tpu.matmul %44, %43, %cst_30 {dimension_numbers = #tpu.dot_dimension_numbers<[1], [1], [2], [2], [0, 0, 0, 2, 1, 2], [0], [0]>} : vector<4x8x16xf32>, vector<4x8x16xf32>, vector<4x16x16xf32> -> vector<4x16x16xf32>
    %cst_31 = arith.constant dense<0xFF800000> : vector<4x16xf32>
    %47 = vector.multi_reduction <maximumf>, %46, %cst_31 [1] : vector<4x16x16xf32> to vector<4x16xf32>
    %48 = vector.shape_cast %47 : vector<4x16xf32> to vector<4x1x16xf32>
    %49 = vector.broadcast %48 : vector<4x1x16xf32> to vector<4x16x16xf32>
    %50 = arith.subf %46, %49 : vector<4x16x16xf32>
    %51 = math.exp %50 : vector<4x16x16xf32>
    %cst_32 = arith.constant dense<0.000000e+00> : vector<4x16xf32>
    %52 = vector.multi_reduction <add>, %51, %cst_32 [1] : vector<4x16x16xf32> to vector<4x16xf32>
    %53 = vector.shape_cast %52 : vector<4x16xf32> to vector<4x1x16xf32>
    %cst_33 = arith.constant dense<0.000000e+00> : vector<4x8x16xf32>
    %54 = tpu.matmul %45, %51, %cst_33 {dimension_numbers = #tpu.dot_dimension_numbers<[2], [1], [1], [2], [0, 0, 0, 1, 1, 2], [0], [0]>} : vector<4x8x16xf32>, vector<4x16x16xf32>, vector<4x8x16xf32> -> vector<4x8x16xf32>
    %55 = tpu.reciprocal %53 {approx = true} : vector<4x1x16xf32> -> vector<4x1x16xf32>
    %56 = vector.broadcast %55 : vector<4x1x16xf32> to vector<4x8x16xf32>
    %57 = arith.mulf %54, %56 : vector<4x8x16xf32>
    %58 = vector.shape_cast %57 : vector<4x8x16xf32> to vector<32x16xf32>
    %59 = vector.extract_strided_slice %40 {offsets = [0, 0, 16], sizes = [4, 8, 16], strides = [1, 1, 1]} : vector<4x8x32xf32> to vector<4x8x16xf32>
    %60 = vector.extract_strided_slice %41 {offsets = [0, 0, 16], sizes = [4, 8, 16], strides = [1, 1, 1]} : vector<4x8x32xf32> to vector<4x8x16xf32>
    %61 = vector.extract_strided_slice %42 {offsets = [0, 0, 16], sizes = [4, 8, 16], strides = [1, 1, 1]} : vector<4x8x32xf32> to vector<4x8x16xf32>
    %cst_34 = arith.constant dense<0.000000e+00> : vector<4x16x16xf32>
    %62 = tpu.matmul %60, %59, %cst_34 {dimension_numbers = #tpu.dot_dimension_numbers<[1], [1], [2], [2], [0, 0, 0, 2, 1, 2], [0], [0]>} : vector<4x8x16xf32>, vector<4x8x16xf32>, vector<4x16x16xf32> -> vector<4x16x16xf32>
    %cst_35 = arith.constant dense<0xFF800000> : vector<4x16xf32>
    %63 = vector.multi_reduction <maximumf>, %62, %cst_35 [1] : vector<4x16x16xf32> to vector<4x16xf32>
    %64 = vector.shape_cast %63 : vector<4x16xf32> to vector<4x1x16xf32>
    %65 = vector.broadcast %64 : vector<4x1x16xf32> to vector<4x16x16xf32>
    %66 = arith.subf %62, %65 : vector<4x16x16xf32>
    %67 = math.exp %66 : vector<4x16x16xf32>
    %cst_36 = arith.constant dense<0.000000e+00> : vector<4x16xf32>
    %68 = vector.multi_reduction <add>, %67, %cst_36 [1] : vector<4x16x16xf32> to vector<4x16xf32>
    %69 = vector.shape_cast %68 : vector<4x16xf32> to vector<4x1x16xf32>
    %cst_37 = arith.constant dense<0.000000e+00> : vector<4x8x16xf32>
    %70 = tpu.matmul %61, %67, %cst_37 {dimension_numbers = #tpu.dot_dimension_numbers<[2], [1], [1], [2], [0, 0, 0, 1, 1, 2], [0], [0]>} : vector<4x8x16xf32>, vector<4x16x16xf32>, vector<4x8x16xf32> -> vector<4x8x16xf32>
    %71 = tpu.reciprocal %69 {approx = true} : vector<4x1x16xf32> -> vector<4x1x16xf32>
    %72 = vector.broadcast %71 : vector<4x1x16xf32> to vector<4x8x16xf32>
    %73 = arith.mulf %70, %72 : vector<4x8x16xf32>
    %74 = vector.shape_cast %73 : vector<4x8x16xf32> to vector<32x16xf32>
    %75 = tpu.concatenate %58, %74 in 1 : vector<32x16xf32>, vector<32x16xf32> -> vector<32x32xf32>
    %c0_38 = arith.constant 0 : index
    %c0_39 = arith.constant 0 : index
    %76 = vector.load %arg7[%c0_38, %c0_39] : memref<32x32xf32, #tpu.memory_space<vmem>>, vector<32x32xf32>
    %cst_40 = arith.constant dense<0.000000e+00> : vector<32x32xf32>
    %77 = tpu.matmul %76, %75, %cst_40 {dimension_numbers = #tpu.dot_dimension_numbers<[1], [0], [0], [1], [0, 0, 1, 1], [], []>} : vector<32x32xf32>, vector<32x32xf32>, vector<32x32xf32> -> vector<32x32xf32>
    %c0_41 = arith.constant 0 : index
    %c0_42 = arith.constant 0 : index
    %78 = vector.load %arg8[%c0_41, %c0_42] : memref<32x1xf32, #tpu.memory_space<vmem>>, vector<32x1xf32>
    %79 = vector.broadcast %78 : vector<32x1xf32> to vector<32x32xf32>
    %80 = arith.addf %77, %79 : vector<32x32xf32>
    %c0_43 = arith.constant 0 : index
    %c0_44 = arith.constant 0 : index
    %81 = vector.load %arg11[%c0_43, %c0_44] : memref<32x32xf32, #tpu.memory_space<vmem>>, vector<32x32xf32>
    tpu.vector_store %arg11[%c0_43, %c0_44], %80 {strides = array<i32>} : memref<32x32xf32, #tpu.memory_space<vmem>>, vector<32x32xf32>,
    return
  }
  func.func @transform_0(%arg0: i32) -> (i32, i32) {
    %c0_i32 = arith.constant 0 : i32
    %c0_i32_0 = arith.constant 0 : i32
    return %c0_i32, %arg0 : i32, i32
  }
  func.func @transform_1(%arg0: i32) -> (i32, i32) {
    %c0_i32 = arith.constant 0 : i32
    %c0_i32_0 = arith.constant 0 : i32
    return %c0_i32, %arg0 : i32, i32
  }
  func.func @transform_2(%arg0: i32) -> (i32, i32) {
    %c0_i32 = arith.constant 0 : i32
    %c0_i32_0 = arith.constant 0 : i32
    %c0_i32_1 = arith.constant 0 : i32
    return %c0_i32, %c0_i32_0 : i32, i32
  }
  func.func @transform_3(%arg0: i32) -> (i32, i32) {
    %c0_i32 = arith.constant 0 : i32
    %c0_i32_0 = arith.constant 0 : i32
    %c0_i32_1 = arith.constant 0 : i32
    return %c0_i32, %c0_i32_0 : i32, i32
  }
  func.func @transform_4(%arg0: i32) -> (i32, i32) {
    %c0_i32 = arith.constant 0 : i32
    %c0_i32_0 = arith.constant 0 : i32
    %c0_i32_1 = arith.constant 0 : i32
    return %c0_i32, %c0_i32_0 : i32, i32
  }
  func.func @transform_5(%arg0: i32) -> (i32, i32) {
    %c0_i32 = arith.constant 0 : i32
    %c0_i32_0 = arith.constant 0 : i32
    %c0_i32_1 = arith.constant 0 : i32
    return %c0_i32, %c0_i32_0 : i32, i32
  }
  func.func @transform_6(%arg0: i32) -> (i32, i32) {
    %c0_i32 = arith.constant 0 : i32
    %c0_i32_0 = arith.constant 0 : i32
    %c0_i32_1 = arith.constant 0 : i32
    return %c0_i32, %c0_i32_0 : i32, i32
  }
  func.func @transform_7(%arg0: i32) -> (i32, i32) {
    %c0_i32 = arith.constant 0 : i32
    %c0_i32_0 = arith.constant 0 : i32
    %c0_i32_1 = arith.constant 0 : i32
    return %c0_i32, %c0_i32_0 : i32, i32
  }
  func.func @transform_8(%arg0: i32) -> (i32, i32, i32) {
    %c0_i32 = arith.constant 0 : i32
    %c0_i32_0 = arith.constant 0 : i32
    %c0_i32_1 = arith.constant 0 : i32
    %c0_i32_2 = arith.constant 0 : i32
    return %c0_i32, %c0_i32_0, %c0_i32_1 : i32, i32, i32
  }
  func.func @transform_9(%arg0: i32) -> (i32, i32, i32) {
    %c0_i32 = arith.constant 0 : i32
    %c0_i32_0 = arith.constant 0 : i32
    %c0_i32_1 = arith.constant 0 : i32
    %c0_i32_2 = arith.constant 0 : i32
    return %c0_i32, %c0_i32_0, %c0_i32_1 : i32, i32, i32
  }
  func.func @transform_10(%arg0: i32) -> (i32, i32) {
    %c0_i32 = arith.constant 0 : i32
    %c0_i32_0 = arith.constant 0 : i32
    return %c0_i32, %arg0 : i32, i32
  }
}

</mosaic_0001>

<bundles_post_ra>
// kernel: tile.14
= control target key start
LH: loop header
LB: loop body
LE: loop exit
PB: predicated region body
PF: predicated region fallthrough
CT: control target
= control target key end

     0   :  { %vm482_vm0 = vcmask 1047556   ;;  %s928_s10 = smov 16   ;;  %vm484_vm1 = vcmask 130048   ;;  %vm593_vm2 = vcmask 261248   ;;  %s1359_s0 = inlined_call_operand.vmem [shape: f32[3,4,8,2,16], index: 0, kind: input, shape index: {}]   ;;  %s1360_s1 = inlined_call_operand.vmem [shape: f32[3,32,32], index: 1, kind: output, shape index: {}]  }
   0x1   :  { %v898_v0 = vld [vmem:[%s1359_s0 + $0xe] sm:$0x3]  ;;  %v899_v1 = vld [vmem:[%s1359_s0 + $0xc] sm:$0x3]  ;;  %v900_v2 = vld [vmem:[%s1359_s0 + $0xa] sm:$0x3] }
   0x2   :  { %448 = vst [vmem:[#allocation0 + $0x38] sm:$0x3] %v898_v0  ;;  %453 = vst [vmem:[#allocation0 + $0x30] sm:$0x3] %v899_v1  ;;  %v901_v3 = vld [vmem:[%s1359_s0 + $0x8] sm:$0x3] }
   0x3   :  { %458 = vst [vmem:[#allocation0 + $0x28] sm:$0x3] %v900_v2  ;;  %v902_v4 = vld [vmem:[%s1359_s0 + $0x6] sm:$0x3]  ;;  %v903_v5 = vld [vmem:[%s1359_s0 + $0x4] sm:$0x3] }
   0x4   :  { %463 = vst [vmem:[#allocation0 + $0x20] sm:$0x3] %v901_v3  ;;  %468 = vst [vmem:[#allocation0 + $0x18] sm:$0x3] %v902_v4  ;;  %v904_v6 = vld [vmem:[%s1359_s0 + $0x2] sm:$0x3] }
   0x5   :  { %473 = vst [vmem:[#allocation0 + $0x10] sm:$0x3] %v903_v5  ;;  %v478_v7 = vld [vmem:[%s1359_s0] sm:$0x3]  ;;  %477 = vst [vmem:[#allocation0 + $0x8] sm:$0x3] %v904_v6 }
   0x6   :  { %479 = vst [vmem:[#allocation0] sm:$0x3] %v478_v7  ;;  %v834_v8 = vld [vmem:[%s1359_s0 + $0x8e] sm:$0x3]  ;;  %v835_v9 = vld [vmem:[%s1359_s0 + $0x8c] sm:$0x3] }
   0x7   :  { %v836_v10 = vld [vmem:[%s1359_s0 + $0x8a] sm:$0x3]  ;;  %128 = vst [vmem:[#allocation0 + $0x238] sm:$0x3] %v834_v8  ;;  %133 = vst [vmem:[#allocation0 + $0x230] sm:$0x3] %v835_v9 }
   0x8   :  { %138 = vst [vmem:[#allocation0 + $0x228] sm:$0x3] %v836_v10  ;;  %v837_v11 = vld [vmem:[%s1359_s0 + $0x88] sm:$0x3]  ;;  %v838_v12 = vld [vmem:[%s1359_s0 + $0x86] sm:$0x3] }
   0x9   :  { %v839_v13 = vld [vmem:[%s1359_s0 + $0x84] sm:$0x3]  ;;  %143 = vst [vmem:[#allocation0 + $0x220] sm:$0x3] %v837_v11  ;;  %148 = vst [vmem:[#allocation0 + $0x218] sm:$0x3] %v838_v12 }
   0xa   :  { %153 = vst [vmem:[#allocation0 + $0x210] sm:$0x3] %v839_v13  ;;  %v840_v14 = vld [vmem:[%s1359_s0 + $0x82] sm:$0x3]  ;;  %v841_v15 = vld [vmem:[%s1359_s0 + $0x80] sm:$0x3] }
   0xb   :  { %v866_v16 = vld [vmem:[%s1359_s0 + $0x4e] sm:$0x3]  ;;  %158 = vst [vmem:[#allocation0 + $0x208] sm:$0x3] %v840_v14  ;;  %163 = vst [vmem:[#allocation0 + $0x200] sm:$0x3] %v841_v15 }
   0xc   :  { %288 = vst [vmem:[#allocation0 + $0x138] sm:$0x3] %v866_v16  ;;  %v867_v17 = vld [vmem:[%s1359_s0 + $0x4c] sm:$0x3]  ;;  %v868_v18 = vld [vmem:[%s1359_s0 + $0x4a] sm:$0x3] }
   0xd   :  { %v869_v19 = vld [vmem:[%s1359_s0 + $0x48] sm:$0x3]  ;;  %293 = vst [vmem:[#allocation0 + $0x130] sm:$0x3] %v867_v17  ;;  %298 = vst [vmem:[#allocation0 + $0x128] sm:$0x3] %v868_v18 }
   0xe   :  { %303 = vst [vmem:[#allocation0 + $0x120] sm:$0x3] %v869_v19  ;;  %v870_v20 = vld [vmem:[%s1359_s0 + $0x46] sm:$0x3]  ;;  %v871_v21 = vld [vmem:[%s1359_s0 + $0x44] sm:$0x3] }
   0xf   :  { %v872_v22 = vld [vmem:[%s1359_s0 + $0x42] sm:$0x3]  ;;  %308 = vst [vmem:[#allocation0 + $0x118] sm:$0x3] %v870_v20  ;;  %313 = vst [vmem:[#allocation0 + $0x110] sm:$0x3] %v871_v21 }
  0x10   :  { %318 = vst [vmem:[#allocation0 + $0x108] sm:$0x3] %v872_v22  ;;  %v873_v23 = vld [vmem:[%s1359_s0 + $0x40] sm:$0x3]  ;;  %v890_v24 = vld [vmem:[%s1359_s0 + $0x1e] sm:$0x3] }
  0x11   :  { %v891_v25 = vld [vmem:[%s1359_s0 + $0x1c] sm:$0x3]  ;;  %v588_v26 = vld [vmem:[#allocation0 + $0x1] ss:$8 sm:$0xf0]  }
  0x12   :  { %323 = vst [vmem:[#allocation0 + $0x100] sm:$0x3] %v873_v23  ;;  %408 = vst [vmem:[#allocation0 + $0x78] sm:$0x3] %v890_v24  ;;  %v892_v27 = vld [vmem:[%s1359_s0 + $0x1a] sm:$0x3] }
  0x13   :  { %413 = vst [vmem:[#allocation0 + $0x70] sm:$0x3] %v891_v25  ;;  %v586_v28 = vld [vmem:[#allocation0 + $0x1] ss:$8 sm:$0xf]  }
  0x14   :  { %418 = vst [vmem:[#allocation0 + $0x68] sm:$0x3] %v892_v27  ;;  %v893_v29 = vld [vmem:[%s1359_s0 + $0x18] sm:$0x3]  ;;  %v590_v30 = vsel %vm482_vm0, %v588_v26, %v586_v28  ;;  %v894_v31 = vld [vmem:[%s1359_s0 + $0x16] sm:$0x3] }
  0x15   :  { %423 = vst [vmem:[#allocation0 + $0x60] sm:$0x3] %v893_v29  ;;  %v895_v32 = vld [vmem:[%s1359_s0 + $0x14] sm:$0x3]  ;;  %v896_v33 = vld [vmem:[%s1359_s0 + $0x12] sm:$0x3]  ;;  %591 = vrot.lane.b32.xlu0 %v590_v30, %s928_s10 }
  0x16   :  { %v609_v34 = vld [vmem:[#allocation0 + $0x201] ss:$8 sm:$0xf0]   ;;  %428 = vst [vmem:[#allocation0 + $0x58] sm:$0x3] %v894_v31 }
  0x17   :  { %433 = vst [vmem:[#allocation0 + $0x50] sm:$0x3] %v895_v32  ;;  %438 = vst [vmem:[#allocation0 + $0x48] sm:$0x3] %v896_v33  ;;  %v897_v35 = vld [vmem:[%s1359_s0 + $0x10] sm:$0x3] }
  0x18   :  { %v607_v36 = vld [vmem:[#allocation0 + $0x201] ss:$8 sm:$0xf]   ;;  %443 = vst [vmem:[#allocation0 + $0x40] sm:$0x3] %v897_v35 }
  0x19   :  { %v858_v37 = vld [vmem:[%s1359_s0 + $0x5e] sm:$0x3]  ;;  %v611_v38 = vsel %vm482_vm0, %v609_v34, %v607_v36  ;;  %v598_v39 = vld [vmem:[#allocation0 + $0x101] ss:$8 sm:$0xf0]  }
  0x1a   :  { %248 = vst [vmem:[#allocation0 + $0x178] sm:$0x3] %v858_v37  ;;  %v859_v40 = vld [vmem:[%s1359_s0 + $0x5c] sm:$0x3]  ;;  %612 = vrot.lane.b32.xlu1 %v611_v38, %s928_s10  ;;  %v860_v41 = vld [vmem:[%s1359_s0 + $0x5a] sm:$0x3] }
  0x1b   :  { %253 = vst [vmem:[#allocation0 + $0x170] sm:$0x3] %v859_v40  ;;  %v861_v42 = vld [vmem:[%s1359_s0 + $0x58] sm:$0x3]  ;;  %v862_v43 = vld [vmem:[%s1359_s0 + $0x56] sm:$0x3] }
  0x1c   :  { %v596_v44 = vld [vmem:[#allocation0 + $0x101] ss:$8 sm:$0xf]   ;;  %258 = vst [vmem:[#allocation0 + $0x168] sm:$0x3] %v860_v41 }
  0x1d   :  { %263 = vst [vmem:[#allocation0 + $0x160] sm:$0x3] %v861_v42  ;;  %268 = vst [vmem:[#allocation0 + $0x158] sm:$0x3] %v862_v43  ;;  %v863_v45 = vld [vmem:[%s1359_s0 + $0x54] sm:$0x3]  ;;  %v600_v46 = vsel %vm482_vm0, %v598_v39, %v596_v44 }
  0x1e   :  { %273 = vst [vmem:[#allocation0 + $0x150] sm:$0x3] %v863_v45  ;;  %v864_v47 = vld [vmem:[%s1359_s0 + $0x52] sm:$0x3]  ;;  %v865_v48 = vld [vmem:[%s1359_s0 + $0x50] sm:$0x3]  ;;  %601 = vrot.lane.b32.xlu0 %v600_v46, %s928_s10 }
  0x1f   :  { %v826_v49 = vld [vmem:[%s1359_s0 + $0x9e] sm:$0x3]  ;;  %v620_v50 = vld [vmem:[#allocation0 + $0x41] ss:$8 sm:$0xf0]  }
  0x20   :  { %278 = vst [vmem:[#allocation0 + $0x148] sm:$0x3] %v864_v47  ;;  %283 = vst [vmem:[#allocation0 + $0x140] sm:$0x3] %v865_v48  ;;  %v827_v51 = vld [vmem:[%s1359_s0 + $0x9c] sm:$0x3] }
  0x21   :  { %88 = vst [vmem:[#allocation0 + $0x278] sm:$0x3] %v826_v49  ;;  %93 = vst [vmem:[#allocation0 + $0x270] sm:$0x3] %v827_v51  ;;  %v828_v52 = vld [vmem:[%s1359_s0 + $0x9a] sm:$0x3] }
  0x22   :  { %v829_v53 = vld [vmem:[%s1359_s0 + $0x98] sm:$0x3]  ;;  %v830_v54 = vld [vmem:[%s1359_s0 + $0x96] sm:$0x3]  ;;  %98 = vst [vmem:[#allocation0 + $0x268] sm:$0x3] %v828_v52 }
  0x23   :  { %v618_v55 = vld [vmem:[#allocation0 + $0x41] ss:$8 sm:$0xf]   ;;  %103 = vst [vmem:[#allocation0 + $0x260] sm:$0x3] %v829_v53 }
  0x24   :  { %108 = vst [vmem:[#allocation0 + $0x258] sm:$0x3] %v830_v54  ;;  %v831_v56 = vld [vmem:[%s1359_s0 + $0x94] sm:$0x3]  ;;  %v622_v57 = vsel %vm482_vm0, %v620_v50, %v618_v55  ;;  %v832_v58 = vld [vmem:[%s1359_s0 + $0x92] sm:$0x3] }
  0x25   :  { %113 = vst [vmem:[#allocation0 + $0x250] sm:$0x3] %v831_v56  ;;  %v833_v59 = vld [vmem:[%s1359_s0 + $0x90] sm:$0x3]  ;;  %v882_v60 = vld [vmem:[%s1359_s0 + $0x2e] sm:$0x3]  ;;  %623 = vrot.lane.b32.xlu1 %v622_v57, %s928_s10 }
  0x26   :  { %118 = vst [vmem:[#allocation0 + $0x248] sm:$0x3] %v832_v58  ;;  %123 = vst [vmem:[#allocation0 + $0x240] sm:$0x3] %v833_v59  ;;  %v883_v61 = vld [vmem:[%s1359_s0 + $0x2c] sm:$0x3] }
  0x27   :  { %368 = vst [vmem:[#allocation0 + $0xb8] sm:$0x3] %v882_v60  ;;  %v884_v62 = vld [vmem:[%s1359_s0 + $0x2a] sm:$0x3]  ;;  %v885_v63 = vld [vmem:[%s1359_s0 + $0x28] sm:$0x3] }
  0x28   :  { %v631_v0 = vld [vmem:[#allocation0 + $0x141] ss:$8 sm:$0xf0]   ;;  %373 = vst [vmem:[#allocation0 + $0xb0] sm:$0x3] %v883_v61 }
  0x29   :  { %378 = vst [vmem:[#allocation0 + $0xa8] sm:$0x3] %v884_v62  ;;  %383 = vst [vmem:[#allocation0 + $0xa0] sm:$0x3] %v885_v63  ;;  %v886_v1 = vld [vmem:[%s1359_s0 + $0x26] sm:$0x3] }
  0x2a   :  { %388 = vst [vmem:[#allocation0 + $0x98] sm:$0x3] %v886_v1  ;;  %v887_v2 = vld [vmem:[%s1359_s0 + $0x24] sm:$0x3]  ;;  %v888_v3 = vld [vmem:[%s1359_s0 + $0x22] sm:$0x3] }
  0x2b   :  { %v889_v4 = vld [vmem:[%s1359_s0 + $0x20] sm:$0x3]  ;;  %393 = vst [vmem:[#allocation0 + $0x90] sm:$0x3] %v887_v2  ;;  %398 = vst [vmem:[#allocation0 + $0x88] sm:$0x3] %v888_v3 }
  0x2c   :  { %v629_v5 = vld [vmem:[#allocation0 + $0x141] ss:$8 sm:$0xf]   ;;  %403 = vst [vmem:[#allocation0 + $0x80] sm:$0x3] %v889_v4 }
  0x2d   :  { %v850_v6 = vld [vmem:[%s1359_s0 + $0x6e] sm:$0x3]  ;;  %v633_v7 = vsel %vm482_vm0, %v631_v0, %v629_v5  ;;  %v851_v8 = vld [vmem:[%s1359_s0 + $0x6c] sm:$0x3]  ;;  %v852_v9 = vld [vmem:[%s1359_s0 + $0x6a] sm:$0x3] }
  0x2e   :  { %208 = vst [vmem:[#allocation0 + $0x1b8] sm:$0x3] %v850_v6  ;;  %v853_v10 = vld [vmem:[%s1359_s0 + $0x68] sm:$0x3]  ;;  %634 = vrot.lane.b32.xlu0 %v633_v7, %s928_s10  ;;  %213 = vst [vmem:[#allocation0 + $0x1b0] sm:$0x3] %v851_v8 }
  0x2f   :  { %v642_v11 = vld [vmem:[#allocation0 + $0x241] ss:$8 sm:$0xf0]   ;;  %218 = vst [vmem:[#allocation0 + $0x1a8] sm:$0x3] %v852_v9 }
  0x30   :  { %223 = vst [vmem:[#allocation0 + $0x1a0] sm:$0x3] %v853_v10  ;;  %v854_v12 = vld [vmem:[%s1359_s0 + $0x66] sm:$0x3]  ;;  %v855_v13 = vld [vmem:[%s1359_s0 + $0x64] sm:$0x3] }
  0x31   :  { %228 = vst [vmem:[#allocation0 + $0x198] sm:$0x3] %v854_v12  ;;  %v856_v14 = vld [vmem:[%s1359_s0 + $0x62] sm:$0x3]  ;;  %v857_v15 = vld [vmem:[%s1359_s0 + $0x60] sm:$0x3] }
  0x32   :  { %v640_v16 = vld [vmem:[#allocation0 + $0x241] ss:$8 sm:$0xf]   ;;  %233 = vst [vmem:[#allocation0 + $0x190] sm:$0x3] %v855_v13 }
  0x33   :  { %238 = vst [vmem:[#allocation0 + $0x188] sm:$0x3] %v856_v14  ;;  %243 = vst [vmem:[#allocation0 + $0x180] sm:$0x3] %v857_v15  ;;  %v874_v17 = vld [vmem:[%s1359_s0 + $0x3e] sm:$0x3]  ;;  %v644_v18 = vsel %vm482_vm0, %v642_v11, %v640_v16 }
  0x34   :  { %v653_v19 = vld [vmem:[#allocation0 + $0x81] ss:$8 sm:$0xf0]   ;;  %328 = vst [vmem:[#allocation0 + $0xf8] sm:$0x3] %v874_v17  ;;  %645 = vrot.lane.b32.xlu1 %v644_v18, %s928_s10 }
  0x35   :  { %v875_v20 = vld [vmem:[%s1359_s0 + $0x3c] sm:$0x3]  ;;  %v876_v21 = vld [vmem:[%s1359_s0 + $0x3a] sm:$0x3]  ;;  %v877_v22 = vld [vmem:[%s1359_s0 + $0x38] sm:$0x3] }
  0x36   :  { %333 = vst [vmem:[#allocation0 + $0xf0] sm:$0x3] %v875_v20  ;;  %v878_v23 = vld [vmem:[%s1359_s0 + $0x36] sm:$0x3]  ;;  %338 = vst [vmem:[#allocation0 + $0xe8] sm:$0x3] %v876_v21 }
  0x37   :  { %v651_v24 = vld [vmem:[#allocation0 + $0x81] ss:$8 sm:$0xf]   ;;  %343 = vst [vmem:[#allocation0 + $0xe0] sm:$0x3] %v877_v22 }
  0x38   :  { %348 = vst [vmem:[#allocation0 + $0xd8] sm:$0x3] %v878_v23  ;;  %v879_v25 = vld [vmem:[%s1359_s0 + $0x34] sm:$0x3]  ;;  %v655_v26 = vsel %vm482_vm0, %v653_v19, %v651_v24  ;;  %v880_v27 = vld [vmem:[%s1359_s0 + $0x32] sm:$0x3] }
  0x39   :  { %353 = vst [vmem:[#allocation0 + $0xd0] sm:$0x3] %v879_v25  ;;  %v881_v28 = vld [vmem:[%s1359_s0 + $0x30] sm:$0x3]  ;;  %v818_v29 = vld [vmem:[%s1359_s0 + $0xae] sm:$0x3]  ;;  %656 = vrot.lane.b32.xlu0 %v655_v26, %s928_s10 }
  0x3a   :  { %v664_v30 = vld [vmem:[#allocation0 + $0x181] ss:$8 sm:$0xf0]   ;;  %358 = vst [vmem:[#allocation0 + $0xc8] sm:$0x3] %v880_v27 }
  0x3b   :  { %363 = vst [vmem:[#allocation0 + $0xc0] sm:$0x3] %v881_v28  ;;  %48 = vst [vmem:[#allocation0 + $0x2b8] sm:$0x3] %v818_v29  ;;  %v819_v31 = vld [vmem:[%s1359_s0 + $0xac] sm:$0x3] }
  0x3c   :  { %53 = vst [vmem:[#allocation0 + $0x2b0] sm:$0x3] %v819_v31  ;;  %v820_v32 = vld [vmem:[%s1359_s0 + $0xaa] sm:$0x3]  ;;  %v821_v33 = vld [vmem:[%s1359_s0 + $0xa8] sm:$0x3] }
  0x3d   :  { %v822_v34 = vld [vmem:[%s1359_s0 + $0xa6] sm:$0x3]  ;;  %v662_v35 = vld [vmem:[#allocation0 + $0x181] ss:$8 sm:$0xf]  }
  0x3e   :  { %58 = vst [vmem:[#allocation0 + $0x2a8] sm:$0x3] %v820_v32  ;;  %63 = vst [vmem:[#allocation0 + $0x2a0] sm:$0x3] %v821_v33  ;;  %v823_v36 = vld [vmem:[%s1359_s0 + $0xa4] sm:$0x3]  ;;  %v666_v37 = vsel %vm482_vm0, %v664_v30, %v662_v35 }
  0x3f   :  { %68 = vst [vmem:[#allocation0 + $0x298] sm:$0x3] %v822_v34  ;;  %73 = vst [vmem:[#allocation0 + $0x290] sm:$0x3] %v823_v36  ;;  %v824_v38 = vld [vmem:[%s1359_s0 + $0xa2] sm:$0x3]  ;;  %667 = vrot.lane.b32.xlu1 %v666_v37, %s928_s10 }
  0x40   :  { %v825_v39 = vld [vmem:[%s1359_s0 + $0xa0] sm:$0x3]  ;;  %v842_v40 = vld [vmem:[%s1359_s0 + $0x7e] sm:$0x3]  ;;  %78 = vst [vmem:[#allocation0 + $0x288] sm:$0x3] %v824_v38 }
  0x41   :  { %83 = vst [vmem:[#allocation0 + $0x280] sm:$0x3] %v825_v39  ;;  %168 = vst [vmem:[#allocation0 + $0x1f8] sm:$0x3] %v842_v40  ;;  %v843_v41 = vld [vmem:[%s1359_s0 + $0x7c] sm:$0x3] }
  0x42   :  { %v844_v42 = vld [vmem:[%s1359_s0 + $0x7a] sm:$0x3]  ;;  %v845_v43 = vld [vmem:[%s1359_s0 + $0x78] sm:$0x3]  ;;  %173 = vst [vmem:[#allocation0 + $0x1f0] sm:$0x3] %v843_v41 }
  0x43   :  { %v686_v44 = vld [vmem:[#allocation0 + $0xc1] ss:$8 sm:$0xf0]   ;;  %178 = vst [vmem:[#allocation0 + $0x1e8] sm:$0x3] %v844_v42 }
  0x44   :  { %183 = vst [vmem:[#allocation0 + $0x1e0] sm:$0x3] %v845_v43  ;;  %v846_v45 = vld [vmem:[%s1359_s0 + $0x76] sm:$0x3]  ;;  %v847_v46 = vld [vmem:[%s1359_s0 + $0x74] sm:$0x3] }
  0x45   :  { %188 = vst [vmem:[#allocation0 + $0x1d8] sm:$0x3] %v846_v45  ;;  %v848_v47 = vld [vmem:[%s1359_s0 + $0x72] sm:$0x3]  ;;  %v849_v48 = vld [vmem:[%s1359_s0 + $0x70] sm:$0x3] }
  0x46   :  { %v684_v49 = vld [vmem:[#allocation0 + $0xc1] ss:$8 sm:$0xf]   ;;  %193 = vst [vmem:[#allocation0 + $0x1d0] sm:$0x3] %v847_v46 }
  0x47   :  { %198 = vst [vmem:[#allocation0 + $0x1c8] sm:$0x3] %v848_v47  ;;  %203 = vst [vmem:[#allocation0 + $0x1c0] sm:$0x3] %v849_v48  ;;  %v810_v50 = vld [vmem:[%s1359_s0 + $0xbe] sm:$0x3]  ;;  %v688_v51 = vsel %vm482_vm0, %v686_v44, %v684_v49 }
  0x48   :  { %8 = vst [vmem:[#allocation0 + $0x2f8] sm:$0x3] %v810_v50  ;;  %v811_v52 = vld [vmem:[%s1359_s0 + $0xbc] sm:$0x3]  ;;  %v812_v53 = vld [vmem:[%s1359_s0 + $0xba] sm:$0x3]  ;;  %689 = vrot.lane.b32.xlu1 %v688_v51, %s928_s10 }
  0x49   :  { %v813_v54 = vld [vmem:[%s1359_s0 + $0xb8] sm:$0x3]  ;;  %13 = vst [vmem:[#allocation0 + $0x2f0] sm:$0x3] %v811_v52  ;;  %18 = vst [vmem:[#allocation0 + $0x2e8] sm:$0x3] %v812_v53 }
  0x4a   :  { %v675_v55 = vld [vmem:[#allocation0 + $0x281] ss:$8 sm:$0xf0]   ;;  %23 = vst [vmem:[#allocation0 + $0x2e0] sm:$0x3] %v813_v54 }
  0x4b   :  { %v814_v56 = vld [vmem:[%s1359_s0 + $0xb6] sm:$0x3]  ;;  %v815_v57 = vld [vmem:[%s1359_s0 + $0xb4] sm:$0x3]  ;;  %v816_v58 = vld [vmem:[%s1359_s0 + $0xb2] sm:$0x3] }
  0x4c   :  { %28 = vst [vmem:[#allocation0 + $0x2d8] sm:$0x3] %v814_v56  ;;  %v817_v59 = vld [vmem:[%s1359_s0 + $0xb0] sm:$0x3]  ;;  %33 = vst [vmem:[#allocation0 + $0x2d0] sm:$0x3] %v815_v57 }
  0x4d   :  { %v673_v60 = vld [vmem:[#allocation0 + $0x281] ss:$8 sm:$0xf]   ;;  %38 = vst [vmem:[#allocation0 + $0x2c8] sm:$0x3] %v816_v58 }
  0x4e   :  { %43 = vst [vmem:[#allocation0 + $0x2c0] sm:$0x3] %v817_v59  ;;  %v480_v61 = vld [vmem:[#allocation0] ss:$8 sm:$0xf]   ;;  %v677_v62 = vsel %vm482_vm0, %v675_v55, %v673_v60 }
  0x4f   :  { %v697_v63 = vld [vmem:[#allocation0 + $0x1c1] ss:$8 sm:$0xf0]   ;;  %v481_v0 = vld [vmem:[#allocation0] ss:$8 sm:$0xf0]   ;;  %678 = vrot.lane.b32.xlu0 %v677_v62, %s928_s10 }
  0x50   :  { %v483_v1 = vsel %vm482_vm0, %v481_v0, %v480_v61  ;;  %v550_v2 = vld [vmem:[#allocation0 + $0x200] ss:$8 sm:$0xf]   ;;  %v695_v4 = vld [vmem:[#allocation0 + $0x1c1] ss:$8 sm:$0xf]  }
  0x51   :  { %v552_v3 = vld [vmem:[#allocation0 + $0x200] ss:$8 sm:$0xf0]   ;;  %485 = vst.msk [vmem:[%s1360_s1] sm:$0xff] %vm484_vm1, %v483_v1   ;;  %v699_v7 = vsel %vm482_vm0, %v697_v63, %v695_v4 }
  0x52   :  { %v554_v5 = vsel %vm482_vm0, %v552_v3, %v550_v2  ;;  %v514_v6 = vld [vmem:[#allocation0 + $0x100] ss:$8 sm:$0xf]   ;;  %v708_v10 = vld [vmem:[#allocation0 + $0x2c1] ss:$8 sm:$0xf0]  }
  0x53   :  { %912 = vst.msk [vmem:[%s1360_s1 + $0x40] sm:$0xff] %vm484_vm1, %v554_v5   ;;  %v516_v8 = vld [vmem:[#allocation0 + $0x100] ss:$8 sm:$0xf0]   ;;  %700 = vrot.lane.b32.xlu0 %v699_v7, %s928_s10 }
  0x54   :  { %v487_v9 = vld [vmem:[#allocation0 + $0x40] ss:$8 sm:$0xf]   ;;  %v518_v11 = vsel %vm482_vm0, %v516_v8, %v514_v6 }
  0x55   :  { %v489_v12 = vld [vmem:[#allocation0 + $0x40] ss:$8 sm:$0xf0]   ;;  %908 = vst.msk [vmem:[%s1360_s1 + $0x20] sm:$0xff] %vm484_vm1, %v518_v11  }
  0x56   :  { %v491_v13 = vsel %vm482_vm0, %v489_v12, %v487_v9  ;;  %v523_v14 = vld [vmem:[#allocation0 + $0x140] ss:$8 sm:$0xf]   ;;  %v706_v16 = vld [vmem:[#allocation0 + $0x2c1] ss:$8 sm:$0xf]  }
  0x57   :  { %v525_v15 = vld [vmem:[#allocation0 + $0x140] ss:$8 sm:$0xf0]   ;;  %905 = vst.msk [vmem:[%s1360_s1 + $0x8] sm:$0xff] %vm484_vm1, %v491_v13   ;;  %v710_v19 = vsel %vm482_vm0, %v708_v10, %v706_v16 }
  0x58   :  { %v527_v17 = vsel %vm482_vm0, %v525_v15, %v523_v14  ;;  %v559_v18 = vld [vmem:[#allocation0 + $0x240] ss:$8 sm:$0xf]   ;;  %711 = vrot.lane.b32.xlu1 %v710_v19, %s928_s10 }
  0x59   :  { %909 = vst.msk [vmem:[%s1360_s1 + $0x28] sm:$0xff] %vm484_vm1, %v527_v17   ;;  %v561_v20 = vld [vmem:[#allocation0 + $0x240] ss:$8 sm:$0xf0]  }
  0x5a   :  { %v496_v21 = vld [vmem:[#allocation0 + $0x80] ss:$8 sm:$0xf]   ;;  %v563_v22 = vsel %vm482_vm0, %v561_v20, %v559_v18 }
  0x5b   :  { %v498_v23 = vld [vmem:[#allocation0 + $0x80] ss:$8 sm:$0xf0]   ;;  %913 = vst.msk [vmem:[%s1360_s1 + $0x48] sm:$0xff] %vm484_vm1, %v563_v22  }
  0x5c   :  { %v532_v24 = vld [vmem:[#allocation0 + $0x180] ss:$8 sm:$0xf]   ;;  %v500_v25 = vsel %vm482_vm0, %v498_v23, %v496_v21 }
  0x5d   :  { %v534_v26 = vld [vmem:[#allocation0 + $0x180] ss:$8 sm:$0xf0]   ;;  %906 = vst.msk [vmem:[%s1360_s1 + $0x10] sm:$0xff] %vm484_vm1, %v500_v25  }
  0x5e   :  { %v505_v27 = vld [vmem:[#allocation0 + $0xc0] ss:$8 sm:$0xf]   ;;  %v536_v28 = vsel %vm482_vm0, %v534_v26, %v532_v24 }
  0x5f   :  { %v507_v29 = vld [vmem:[#allocation0 + $0xc0] ss:$8 sm:$0xf0]   ;;  %910 = vst.msk [vmem:[%s1360_s1 + $0x30] sm:$0xff] %vm484_vm1, %v536_v28  }
  0x60   :  { %v568_v30 = vld [vmem:[#allocation0 + $0x280] ss:$8 sm:$0xf]   ;;  %v509_v31 = vsel %vm482_vm0, %v507_v29, %v505_v27 }
  0x61   :  { %v570_v32 = vld [vmem:[#allocation0 + $0x280] ss:$8 sm:$0xf0]   ;;  %907 = vst.msk [vmem:[%s1360_s1 + $0x18] sm:$0xff] %vm484_vm1, %v509_v31  }
  0x62   :  { %v541_v33 = vld [vmem:[#allocation0 + $0x1c0] ss:$8 sm:$0xf]   ;;  %v572_v34 = vsel %vm482_vm0, %v570_v32, %v568_v30 }
  0x63   :  { %v543_v35 = vld [vmem:[#allocation0 + $0x1c0] ss:$8 sm:$0xf0]   ;;  %914 = vst.msk [vmem:[%s1360_s1 + $0x50] sm:$0xff] %vm484_vm1, %v572_v34  }
  0x64   :  { %v577_v36 = vld [vmem:[#allocation0 + $0x2c0] ss:$8 sm:$0xf]   ;;  %v545_v37 = vsel %vm482_vm0, %v543_v35, %v541_v33 }
  0x65   :  { %v579_v38 = vld [vmem:[#allocation0 + $0x2c0] ss:$8 sm:$0xf0]   ;;  %911 = vst.msk [vmem:[%s1360_s1 + $0x38] sm:$0xff] %vm484_vm1, %v545_v37  }
  0x66   :  { %v581_v39 = vsel %vm482_vm0, %v579_v38, %v577_v36 }
  0x67   :  { %915 = vst.msk [vmem:[%s1360_s1 + $0x58] sm:$0xff] %vm484_vm1, %v581_v39  }
  0x87   :  { %v592_v40 = vpop.permute.xlu0 %591  }
  0x88   :  { %594 = vst.msk [vmem:[%s1360_s1] sm:$0xff] %vm593_vm2, %v592_v40  }
  0x8c   :  { %v613_v41 = vpop.permute.xlu1 %612  }
  0x8d   :  { %917 = vst.msk [vmem:[%s1360_s1 + $0x40] sm:$0xff] %vm593_vm2, %v613_v41  }
  0x90   :  { %v602_v42 = vpop.permute.xlu0 %601  }
  0x91   :  { %916 = vst.msk [vmem:[%s1360_s1 + $0x20] sm:$0xff] %vm593_vm2, %v602_v42  }
  0x97   :  { %v624_v43 = vpop.permute.xlu1 %623  }
  0x98   :  { %918 = vst.msk [vmem:[%s1360_s1 + $0x8] sm:$0xff] %vm593_vm2, %v624_v43  }
  0xa0   :  { %v635_v44 = vpop.permute.xlu0 %634  }
  0xa1   :  { %919 = vst.msk [vmem:[%s1360_s1 + $0x28] sm:$0xff] %vm593_vm2, %v635_v44  }
  0xa6   :  { %v646_v45 = vpop.permute.xlu1 %645  }
  0xa7   :  { %920 = vst.msk [vmem:[%s1360_s1 + $0x48] sm:$0xff] %vm593_vm2, %v646_v45  }
  0xab   :  { %v657_v46 = vpop.permute.xlu0 %656  }
  0xac   :  { %921 = vst.msk [vmem:[%s1360_s1 + $0x10] sm:$0xff] %vm593_vm2, %v657_v46  }
  0xb1   :  { %v668_v47 = vpop.permute.xlu1 %667  }
  0xb2   :  { %922 = vst.msk [vmem:[%s1360_s1 + $0x30] sm:$0xff] %vm593_vm2, %v668_v47  }
  0xba   :  { %v690_v48 = vpop.permute.xlu1 %689  }
  0xbb   :  { %924 = vst.msk [vmem:[%s1360_s1 + $0x18] sm:$0xff] %vm593_vm2, %v690_v48  }
  0xc1   :  { %v679_v49 = vpop.permute.xlu0 %678  }
  0xc2   :  { %923 = vst.msk [vmem:[%s1360_s1 + $0x50] sm:$0xff] %vm593_vm2, %v679_v49  }
  0xc5   :  { %v701_v50 = vpop.permute.xlu0 %700  }
  0xc6   :  { %925 = vst.msk [vmem:[%s1360_s1 + $0x38] sm:$0xff] %vm593_vm2, %v701_v50  }
  0xca   :  { %v712_v51 = vpop.permute.xlu1 %711  }
  0xcb   :  { %926 = vst.msk [vmem:[%s1360_s1 + $0x58] sm:$0xff] %vm593_vm2, %v712_v51  }

// kernel: multi_head_attention_forward.1
= control target key start
LH: loop header
LB: loop body
LE: loop exit
PB: predicated region body
PF: predicated region fallthrough
CT: control target
= control target key end

     0   :  { %vm71_vm0 = vcmask 261120   ;;  %v2735_v3 = vmov 0   ;;  %v390_v38 = vlaneseq  ;;  %vm490_vm3 = vcmask 64512   ;;  %s2740_s27 = smov 16   ;;  %s3240_s0 = inlined_call_operand.vmem [shape: f32[32,32], index: 0, kind: input, shape index: {}]   ;;  %s3241_s2 = inlined_call_operand.vmem [shape: f32[32,32], index: 2, kind: input, shape index: {}]   ;;  %s3242_s1 = inlined_call_operand.vmem [shape: f32[32,32], index: 1, kind: input, shape index: {}]   ;;  %s3243_s5 = inlined_call_operand.vmem [shape: f32[64,1], index: 5, kind: input, shape index: {}]   ;;  %s3244_s3 = inlined_call_operand.vmem [shape: f32[32,1], index: 3, kind: input, shape index: {}]   ;;  %s3245_s4 = inlined_call_operand.vmem [shape: f32[64,32], index: 4, kind: input, shape index: {}]   ;;  %s3246_s8 = inlined_call_operand.vmem [shape: f32[3,32,32], index: 8, kind: input, shape index: {}]   ;;  %s3247_s9 = inlined_call_operand.vmem [shape: f32[3,32,32], index: 9, kind: input, shape index: {}]   ;;  %s3248_s6 = inlined_call_operand.vmem [shape: f32[32,32], index: 6, kind: input, shape index: {}]   ;;  %s3249_s7 = inlined_call_operand.vmem [shape: f32[32,1], index: 7, kind: input, shape index: {}]   ;;  %s3250_s10 = inlined_call_operand.vmem [shape: f32[32,32], index: 10, kind: output, shape index: {}]  }
   0x1   :  { %v35_v0 = vld [vmem:[%s3240_s0] sm:$0xff]  ;;  %v36_v1 = vld [vmem:[%s3240_s0 + $0x8] sm:$0xff]  ;;  %v37_v2 = vld [vmem:[%s3240_s0 + $0x10] sm:$0xff]  ;;  %2675 = vset.pattern.permute.xlu0 %v2735_v3  ;;  %2676 = vset.pattern.permute.xlu1 %v2735_v3  ;;  %vm2738_vm4 = vmmov 0   ;;  %vm911_vm5 = vcmask 130048  }
   0x2   :  { %v2621_v4 = vpack.c.bf16 %v36_v1, %v35_v0  ;;  %v38_v5 = vld [vmem:[%s3240_s0 + $0x18] sm:$0xff]  ;;  %v43_v6 = vld [vmem:[%s3241_s2] sm:$0xff]  ;;  %v40_v9 = vld [vmem:[%s3242_s1 + $0x8] sm:$0xff]  ;;  %v2896_v41 = vshrl.u32 %v390_v38, 7 }
   0x3   :  { %v2625_v7 = vpack.c.bf16 %v38_v5, %v37_v2  ;;  %2485 = vmatprep.mubr.msk.f32.mxu1 %vm71_vm0, %v43_v6  ;;  %v39_v8 = vld [vmem:[%s3242_s1] sm:$0xff]  ;;  %v41_v12 = vld [vmem:[%s3242_s1 + $0x10] sm:$0xff]  ;;  %v42_v13 = vld [vmem:[%s3242_s1 + $0x18] sm:$0xff] }
   0x4   :  { %2622 = vmatprep.subr.bf16.mxu1 %v2621_v4  ;;  %v2629_v10 = vpack.c.bf16 %v40_v9, %v39_v8  ;;  %v177_v11 = vld [vmem:[%s3243_s5] sm:$0xff]  ;;  %v178_v14 = vld [vmem:[%s3243_s5 + $0x8] sm:$0xff]  ;;  %v180_v15 = vld [vmem:[%s3243_s5 + $0x18] sm:$0xff]  ;;  %v2633_v19 = vpack.c.bf16 %v42_v13, %v41_v12  ;;  %vm392_vm1 = vcmp.lt.s32.totalorder %v2896_v41, 2  ;;  %vm409_vm2 = vcmp.lt.s32.totalorder %v2896_v41, 6 }
   0x5   :  { %2624 = vmatpush3.bf16.msra.mxu1 %v2621_v4  ;;  %187 = vperm.xlu0 %2675, %v177_v11   ;;  %v44_v16 = vld [vmem:[%s3241_s2 + $0x8] sm:$0xff]  ;;  %v179_v17 = vld [vmem:[%s3243_s5 + $0x10] sm:$0xff]  ;;  %v47_v20 = vld [vmem:[%s3244_s3] sm:$0xff] }
   0x6   :  { %2626 = vmatprep.subr.bf16.mxu1 %v2625_v7  ;;  %192 = vperm.xlu1 %2676, %v178_v14   ;;  %v45_v18 = vld [vmem:[%s3241_s2 + $0x10] sm:$0xff]  ;;  %v46_v21 = vld [vmem:[%s3241_s2 + $0x18] sm:$0xff]  ;;  %v169_v23 = vld [vmem:[%s3245_s4] sm:$0xff] }
   0x7   :  { %v50_v22 = vld [vmem:[%s3244_s3 + $0x18] sm:$0xff]  ;;  %v48_v24 = vld [vmem:[%s3244_s3 + $0x8] sm:$0xff]  ;;  %v49_v26 = vld [vmem:[%s3244_s3 + $0x10] sm:$0xff] }
   0x8   :  { %v170_v25 = vld [vmem:[%s3245_s4 + $0x8] sm:$0xff]  ;;  %v171_v27 = vld [vmem:[%s3245_s4 + $0x10] sm:$0xff]  ;;  %v172_v28 = vld [vmem:[%s3245_s4 + $0x18] sm:$0xff] }
   0x9   :  { %2628 = vmatpush3.bf16.msra.mxu1 %v2625_v7  ;;  %202 = vperm.xlu0 %2675, %v180_v15   ;;  %v173_v29 = vld [vmem:[%s3245_s4 + $0x20] sm:$0xff]  ;;  %v174_v30 = vld [vmem:[%s3245_s4 + $0x28] sm:$0xff]  ;;  %v175_v31 = vld [vmem:[%s3245_s4 + $0x30] sm:$0xff] }
   0xa   :  { %2630 = vmatprep.subr.bf16.mxu1 %v2629_v10  ;;  %197 = vperm.xlu1 %2676, %v179_v17   ;;  %v176_v32 = vld [vmem:[%s3245_s4 + $0x38] sm:$0xff]  ;;  %v355_v46 = vld [vmem:[%s3246_s8 + $0x8] sm:$0xff]  ;;  %v354_v50 = vld [vmem:[%s3246_s8] sm:$0xff] }
   0xb   :  { %v357_v54 = vld [vmem:[%s3246_s8 + $0x18] sm:$0xff]  ;;  %v356_v57 = vld [vmem:[%s3246_s8 + $0x10] sm:$0xff]  ;;  %v2361_v58 = vld [vmem:[%s3246_s8 + $0x40] sm:$0xff] }
   0xc   :  { %2486 = vmatmul.mubr.msk.f32.vlgmr.msra.gmra.mrb[0].mxu1 %vm71_vm0, %v44_v16  ;;  %v2358_v59 = vld [vmem:[%s3246_s8 + $0x28] sm:$0xff]  ;;  %v2357_v4 = vld [vmem:[%s3246_s8 + $0x20] sm:$0xff] }
   0xd   :  { %2632 = vmatpush3.bf16.msra.mxu1 %v2629_v10  ;;  %2488 = vmatprep.mubr.msk.f32.mxu1 %vm71_vm0, %v45_v18  ;;  %v369_v8 = vld [vmem:[%s3247_s9 + $0x8] sm:$0xff]  ;;  %v368_v15 = vld [vmem:[%s3247_s9] sm:$0xff] }
   0xe   :  { %2634 = vmatprep.subr.bf16.mxu1 %v2633_v19  ;;  %53 = vperm.xlu0 %2675, %v47_v20   ;;  %v2362_v10 = vld [vmem:[%s3246_s8 + $0x48] sm:$0xff]  ;;  %v181_v41 = vld [vmem:[%s3243_s5 + $0x20] sm:$0xff] }
   0xf   :  { %68 = vperm.xlu1 %2676, %v50_v22  }
  0x10   :  { %2489 = vmatmul.mubr.msk.f32.gmra.mrb[2].mxu1 %vm71_vm0, %v46_v21 }
  0x11   :  { %2636 = vmatpush3.bf16.msra.mxu1 %v2633_v19  ;;  %2499 = vmatprep.mubr.msk.f32.mxu1 %vm71_vm0, %v169_v23 }
  0x12   :  { %58 = vperm.xlu0 %2675, %v48_v24  }
  0x13   :  { %63 = vperm.xlu1 %2676, %v49_v26  }
  0x14   :  { %2500 = vmatmul.mubr.msk.f32.vlgmr.msra.gmra.mrb[4].mxu1 %vm71_vm0, %v170_v25 }
  0x15   :  { %2502 = vmatprep.mubr.msk.f32.mxu1 %vm71_vm0, %v171_v27 }
  0x18   :  { %2503 = vmatmul.mubr.msk.f32.gmra.mrb[6].mxu1 %vm71_vm0, %v172_v28 }
  0x19   :  { %2505 = vmatprep.mubr.msk.f32.mxu1 %vm71_vm0, %v173_v29 }
  0x1c   :  { %2506 = vmatmul.mubr.msk.f32.gmra.mrb[8].mxu1 %vm71_vm0, %v174_v30  ;;  %v371_v30 = vld [vmem:[%s3247_s9 + $0x18] sm:$0xff] }
  0x1d   :  { %2508 = vmatprep.mubr.msk.f32.mxu1 %vm71_vm0, %v175_v31 }
  0x20   :  { %2509 = vmatmul.mubr.msk.f32.gmra.mrb[10].mxu1 %vm71_vm0, %v176_v32  ;;  %v2366_v32 = vld [vmem:[%s3247_s9 + $0x28] sm:$0xff] }
  0x84   :  { %v188_v33 = vpop.permute.xlu0 %187 }
  0x85   :  { %v193_v34 = vpop.permute.xlu1 %192 }
  0x88   :  { %v2892_v35 = vpop.permute.xlu0 %202 }
  0x89   :  { %v2894_v36 = vpop.permute.xlu1 %197 }
  0x8d   :  { %v54_v37 = vpop.permute.xlu0 %53 }
  0x8e   :  { %v69_v39 = vpop.permute.xlu1 %68 }
  0x91   :  { %v59_v40 = vpop.permute.xlu0 %58 }
  0x92   :  { %v64_v49 = vpop.permute.xlu1 %63 }
  0xdf   :  { %v2487_v42 = vpop.f32.mrb[0].mxu1 }
  0xe0   :  { %v2898_v43 = vadd.f32 %v2487_v42, %v59_v40  ;;  %v150_v44 = vpop.f32.mrb[1].mxu1 }
  0xe1   :  { %v151_v45 = vadd.f32 %v150_v44, %v54_v37  ;;  %v370_v37 = vld [vmem:[%s3247_s9 + $0x10] sm:$0xff] }
  0xe2   :  { %v387_v47 = vrot.slane %v2898_v43, 6  ;;  %v406_v48 = vrot.slane %v2898_v43, 2  ;;  %v383_v60 = vmul.f32 %v355_v46, %v2898_v43  ;;  %v2359_v46 = vld [vmem:[%s3246_s8 + $0x30] sm:$0xff] }
  0xe3   :  { %v386_v51 = vrot.slane %v151_v45, 6  ;;  %v405_v52 = vrot.slane %v151_v45, 2  ;;  %v2490_v53 = vpop.f32.mrb[2].mxu1  ;;  %v382_v0 = vmul.f32 %v354_v50, %v151_v45 }
  0xe4   :  { %v2913_v55 = vadd.f32 %v2490_v53, %v69_v39  ;;  %v160_v56 = vpop.f32.mrb[3].mxu1  ;;  %v2369_v39 = vld [vmem:[%s3247_s9 + $0x40] sm:$0xff] }
  0xe5   :  { %v2925_v61 = vadd.f32 %v160_v56, %v64_v49  ;;  %v412_v62 = vsel %vm409_vm2, %v405_v52, %v406_v48  ;;  %v395_v63 = vsel %vm392_vm1, %v386_v51, %v387_v47 }
  0xe6   :  { %v2932_v1 = vmul.f32 %v357_v54, %v2913_v55  ;;  %v389_v2 = vrot.slane %v2913_v55, 6  ;;  %v408_v3 = vrot.slane %v2913_v55, 2  ;;  %v414_v9 = vmul.f32 %v2361_v58, %v412_v62  ;;  %v2370_v54 = vld [vmem:[%s3247_s9 + $0x48] sm:$0xff]  ;;  %v2371_v58 = vld [vmem:[%s3247_s9 + $0x50] sm:$0xff]  ;;  %v2368_v62 = vld [vmem:[%s3247_s9 + $0x38] sm:$0xff] }
  0xe7   :  { %v2940_v5 = vmul.f32 %v356_v57, %v2925_v61  ;;  %v407_v6 = vrot.slane %v2925_v61, 2  ;;  %v2501_v7 = vpop.f32.mrb[4].mxu1  ;;  %v398_v11 = vmul.f32 %v2358_v59, %v395_v63  ;;  %v388_v12 = vrot.slane %v2925_v61, 6  ;;  %v2367_v57 = vld [vmem:[%s3247_s9 + $0x30] sm:$0xff]  ;;  %v2372_v63 = vld [vmem:[%s3247_s9 + $0x58] sm:$0xff] }
  0xe8   :  { %v321_v13 = vadd.f32 %v2501_v7, %v193_v34  ;;  %v315_v14 = vpop.f32.mrb[5].mxu1  ;;  %v396_v16 = vsel %vm392_vm1, %v389_v2, %v386_v51  ;;  %v2959_v17 = vsel %vm409_vm2, %v408_v3, %v405_v52 }
  0xe9   :  { %v316_v18 = vadd.f32 %v315_v14, %v188_v33  ;;  %v397_v19 = vmul.f32 %v2357_v4, %v396_v16  ;;  %v402_v20 = vadd.f32 %v398_v11, %v383_v60  ;;  %v411_v21 = vsel %vm409_vm2, %v406_v48, %v407_v6  ;;  %v2364_v16 = vld [vmem:[%s3246_s8 + $0x58] sm:$0xff] }
  0xea   :  { %v423_v22 = vmul.f32 %v369_v8, %v321_v13  ;;  %v427_v23 = vrot.slane %v321_v13, 6  ;;  %v443_v24 = vrot.slane %v321_v13, 2  ;;  %v415_v25 = vmul.f32 %v2362_v10, %v411_v21 }
  0xeb   :  { %v422_v26 = vmul.f32 %v368_v15, %v316_v18  ;;  %v426_v27 = vrot.slane %v316_v18, 6  ;;  %v442_v28 = vrot.slane %v316_v18, 2  ;;  %v2504_v29 = vpop.f32.mrb[6].mxu1  ;;  %v401_v31 = vadd.f32 %v397_v19, %v382_v0  ;;  %v2360_v15 = vld [vmem:[%s3246_s8 + $0x38] sm:$0xff] }
  0xec   :  { %v331_v33 = vadd.f32 %v2504_v29, %v2892_v35  ;;  %v325_v34 = vpop.f32.mrb[7].mxu1  ;;  %v2973_v38 = vadd.f32 %v415_v25, %v402_v20  ;;  %v394_v40 = vsel %vm392_vm1, %v387_v47, %v388_v12  ;;  %v410_v42 = vsel %vm409_vm2, %v407_v6, %v408_v3 }
  0xed   :  { %v326_v35 = vadd.f32 %v325_v34, %v2894_v36  ;;  %v2985_v43 = vadd.f32 %v414_v9, %v401_v31  ;;  %v432_v44 = vsel %vm392_vm1, %v426_v27, %v427_v23  ;;  %v448_v45 = vsel %vm409_vm2, %v442_v28, %v443_v24  ;;  %v2365_v36 = vld [vmem:[%s3247_s9 + $0x20] sm:$0xff]  ;;  %v2363_v9 = vld [vmem:[%s3246_s8 + $0x50] sm:$0xff]  ;;  %s2736_s8 = smov 112   ;;  %v184_v34 = vld [vmem:[%s3243_s5 + $0x38] sm:$0xff] }
  0xee   :  { %v425_v48 = vmul.f32 %v371_v30, %v331_v33  ;;  %v429_v49 = vrot.slane %v331_v33, 6  ;;  %v445_v47 = vrot.slane %v331_v33, 2  ;;  %v435_v50 = vmul.f32 %v2366_v32, %v432_v44 }
  0xef   :  { %v424_v51 = vmul.f32 %v370_v37, %v326_v35  ;;  %v428_v52 = vrot.slane %v326_v35, 6  ;;  %v444_v53 = vrot.slane %v326_v35, 2  ;;  %2511 = vmatprep.subr.mxu0 %v2985_v43  ;;  %v450_v56 = vmul.f32 %v2369_v39, %v448_v45  ;;  %v2507_v55 = vpop.f32.mrb[8].mxu1 }
  0xf0   :  { %2512 = vmatpush3.msra.mxu0 %v2985_v43  ;;  %v439_v59 = vadd.f32 %v435_v50, %v423_v22  ;;  %v433_v60 = vsel %vm392_vm1, %v429_v49, %v426_v27  ;;  %v449_v0 = vsel %vm409_vm2, %v445_v47, %v442_v28  ;;  %v399_v3 = vmul.f32 %v2359_v46, %v394_v40  ;;  %v335_v61 = vpop.f32.mrb[9].mxu1 }
  0xf1   :  { %2516 = vmatprep.subr.mxu0 %v2973_v38  ;;  %v447_v4 = vsel %vm409_vm2, %v443_v24, %v444_v53  ;;  %v434_v6 = vmul.f32 %v2365_v36, %v433_v60  ;;  %v431_v7 = vsel %vm392_vm1, %v427_v23, %v428_v52  ;;  %v446_v8 = vsel %vm409_vm2, %v444_v53, %v445_v47 }
  0xf2   :  { %v451_v10 = vmul.f32 %v2370_v54, %v447_v4  ;;  %v436_v11 = vmul.f32 %v2367_v57, %v431_v7  ;;  %v452_v13 = vmul.f32 %v2371_v58, %v446_v8  ;;  %v430_v14 = vsel %vm392_vm1, %v428_v52, %v429_v49 }
  0xf3   :  { %v438_v18 = vadd.f32 %v434_v6, %v422_v26  ;;  %v437_v19 = vmul.f32 %v2368_v62, %v430_v14  ;;  %v453_v20 = vmul.f32 %v2372_v63, %v449_v0  ;;  %v403_v21 = vadd.f32 %v399_v3, %v2940_v5 }
  0xf4   :  { %v455_v22 = vadd.f32 %v451_v10, %v439_v59  ;;  %v440_v23 = vadd.f32 %v436_v11, %v424_v51  ;;  %v416_v24 = vmul.f32 %v2363_v9, %v410_v42  ;;  %v393_v25 = vsel %vm392_vm1, %v388_v12, %v389_v2  ;;  %v2510_v2 = vpop.f32.mrb[10].mxu1 }
  0xf5   :  { %v454_v27 = vadd.f32 %v450_v56, %v438_v18  ;;  %v441_v28 = vadd.f32 %v437_v19, %v425_v48  ;;  %v400_v29 = vmul.f32 %v2360_v15, %v393_v25  ;;  %v417_v30 = vmul.f32 %v2364_v16, %v2959_v17  ;;  %v345_v12 = vpop.f32.mrb[11].mxu1  ;;  %v182_v17 = vld [vmem:[%s3243_s5 + $0x28] sm:$0xff] }
  0xf6   :  { %572 = vxpose.xlu1.b32.start.end [1/1] (short) (narrow) %v455_v22, 16  ;;  %v456_v26 = vadd.f32 %v452_v13, %v440_v23  ;;  %v420_v31 = vadd.f32 %v416_v24, %v403_v21  ;;  %v2737_v57 = vmov 0.0|0.0   ;;  %v2739_v58 = vmov 0.0  }
  0xf7   :  { %458 = vxpose.xlu0.b32.start.end [1/1] (short) (narrow) %v454_v27, 16  ;;  %v457_v5 = vadd.f32 %v453_v20, %v441_v28  ;;  %v404_v32 = vadd.f32 %v400_v29, %v2932_v1  ;;  %v183_v1 = vld [vmem:[%s3243_s5 + $0x30] sm:$0xff]  ;;  %2640 = vmatprep.subr.bf16.mxu1 %v2737_v57 }
  0xf8   :  { %2542 = vmatprep.mubr.msk.f32.mxu1 %vm2738_vm4, %v2739_v58 }
  0xf9   :  { %v421_v33 = vadd.f32 %v417_v30, %v404_v32 }
  0xfc   :  { %685 = vxpose.xlu0.b32.start.end [1/1] (short) (narrow) %v456_v26, 16 }
 0x101   :  { %798 = vxpose.xlu0.b32.start.end [1/1] (short) (narrow) %v457_v5, 16 }
 0x118   :  { %1430 = vrot.lane.b32.xlu1 %v455_v22, %s2736_s8 }
 0x11c   :  { %1551 = vrot.lane.b32.xlu1 %v456_v26, %s2736_s8 }
 0x120   :  { %1672 = vrot.lane.b32.xlu1 %v457_v5, %s2736_s8 }
 0x124   :  { %207 = vperm.xlu1 %2676, %v181_v41  }
 0x128   :  { %217 = vperm.xlu1 %2676, %v183_v1  }
 0x12c   :  { %1345 = vrot.lane.b32.xlu1 %v2985_v43, %s2736_s8 }
 0x12e   :  { %1309 = vrot.lane.b32.xlu0 %v454_v27, %s2736_s8 }
 0x130   :  { %1587 = vrot.lane.b32.xlu1 %v420_v31, %s2736_s8 }
 0x132   :  { %212 = vperm.xlu0 %2675, %v182_v17  }
 0x136   :  { %222 = vperm.xlu0 %2675, %v184_v34  }
 0x13a   :  { %1466 = vrot.lane.b32.xlu0 %v2973_v38, %s2736_s8 }
 0x13e   :  { %1708 = vrot.lane.b32.xlu0 %v421_v33, %s2736_s8 }
 0x176   :  { %v588_v39 = vpop.trf.xlu1 }
 0x177   :  { %v474_v37 = vpop.trf.xlu0 }
 0x178   :  { %2513 = vmatprep.mubr.msk.f32.mxu0 %vm490_vm3, %v474_v37 }
 0x17a   :  { %v589_v42 = vpop.trf.xlu1 }
 0x17b   :  { %v475_v40 = vpop.trf.xlu0 }
 0x17c   :  { %2514 = vmatmul.mubr.msk.f32.vlgmr.msra.gmra.mrb[0].mxu0 %vm490_vm3, %v475_v40 }
 0x17d   :  { %2517 = vmatpush3.msra.mxu0 %v2973_v38  ;;  %2518 = vmatprep.mubr.msk.f32.mxu0 %vm490_vm3, %v588_v39 }
 0x17e   :  { %2521 = vmatprep.subr.mxu0 %v420_v31 }
 0x17f   :  { %v701_v35 = vpop.trf.xlu0 }
 0x180   :  { %2519 = vmatmul.mubr.msk.f32.vlgmr.msra.gmra.mrb[2].mxu0 %vm490_vm3, %v589_v42 }
 0x181   :  { %2522 = vmatpush3.msra.mxu0 %v420_v31  ;;  %2523 = vmatprep.mubr.msk.f32.mxu0 %vm490_vm3, %v701_v35 }
 0x182   :  { %2526 = vmatprep.subr.mxu0 %v421_v33 }
 0x183   :  { %v702_v43 = vpop.trf.xlu0 }
 0x184   :  { %2524 = vmatmul.mubr.msk.f32.vlgmr.msra.gmra.mrb[4].mxu0 %vm490_vm3, %v702_v43 }
 0x185   :  { %2527 = vmatpush3.msra.mxu0 %v421_v33 }
 0x186   :  { %2637 = vmatprep.subr.bf16.mxu0 %v2737_v57 }
 0x187   :  { %v814_v44 = vpop.trf.xlu0 }
 0x188   :  { %2528 = vmatprep.mubr.msk.f32.mxu0 %vm490_vm3, %v814_v44 }
 0x18a   :  { %v1431_v45 = vpop.permute.xlu1 %1430 }
 0x18b   :  { %v815_v38 = vpop.trf.xlu0  ;;  %1433 = vxpose.xlu0.b32.start.end [1/1] (short) (narrow) %v1431_v45, 16 }
 0x18c   :  { %2529 = vmatmul.mubr.msk.f32.vlgmr.msra.gmra.mrb[6].mxu0 %vm490_vm3, %v815_v38 }
 0x18d   :  { %2535 = vmatprep.mubr.msk.f32.mxu0 %vm2738_vm4, %v2739_v58 }
 0x18e   :  { %v1552_v46 = vpop.permute.xlu1 %1551 }
 0x190   :  { %1554 = vxpose.xlu0.b32.start.end [1/1] (short) (narrow) %v1552_v46, 16 }
 0x192   :  { %v1673_v48 = vpop.permute.xlu1 %1672 }
 0x195   :  { %1675 = vxpose.xlu0.b32.start.end [1/1] (short) (narrow) %v1673_v48, 16 }
 0x1a0   :  { %v1310_v49 = vpop.permute.xlu0 %1309 }
 0x1a1   :  { %1312 = vxpose.xlu1.b32.start.end [1/1] (short) (narrow) %v1310_v49, 16 }
 0x1a3   :  { %v208_v47 = vpop.permute.xlu1 %207 }
 0x1a4   :  { %v3078_v51 = vadd.f32 %v335_v61, %v208_v47 }
 0x1a7   :  { %v218_v52 = vpop.permute.xlu1 %217 }
 0x1a8   :  { %v3084_v53 = vadd.f32 %v345_v12, %v218_v52 }
 0x1b1   :  { %v213_v50 = vpop.permute.xlu0 %212 }
 0x1b2   :  { %v3076_v36 = vadd.f32 %v2507_v55, %v213_v50 }
 0x1b5   :  { %v223_v54 = vpop.permute.xlu0 %222 }
 0x1b6   :  { %v3088_v56 = vadd.f32 %v2510_v2, %v223_v54 }
 0x1b9   :  { %v3106_v39 = vpop.permute.xlu0 %1466 }
 0x1bd   :  { %v3108_v47 = vpop.permute.xlu0 %1708 }
 0x1c2   :  { %1962 = vrot.lane.b32.xlu0 %v3076_v36, %s2736_s8 }
 0x1c3   :  { %1888 = vrot.lane.b32.xlu1 %v3078_v51, %s2736_s8 }
 0x1c7   :  { %2036 = vrot.lane.b32.xlu1 %v3084_v53, %s2736_s8 }
 0x1cb   :  { %2110 = vrot.lane.b32.xlu1 %v3088_v56, %s2736_s8 }
 0x24f   :  { %v2515_v59 = vpop.f32.mrb[0].mxu0 }
 0x250   :  { %v913_v60 = vsel %vm911_vm5, %v2515_v59, -inf  ;;  %v563_v62 = vpop.f32.mrb[1].mxu0 }
 0x251   :  { %v912_v63 = vsel %vm911_vm5, %v563_v62, -inf }
 0x252   :  { %v914_v0 = vmax.f32 %v912_v63, %v913_v60  ;;  %v1449_v60 = vpop.trf.xlu0 }
 0x253   :  { %v2520_v3 = vpop.f32.mrb[2].mxu0 }
 0x254   :  { %v915_v4 = vrot.slane %v914_v0, 4  ;;  %v922_v6 = vsel %vm911_vm5, %v2520_v3, -inf  ;;  %v676_v7 = vpop.f32.mrb[3].mxu0 }
 0x255   :  { %v921_v8 = vsel %vm911_vm5, %v676_v7, -inf }
 0x256   :  { %v916_v9 = vmax.f32 %v914_v0, %v915_v4  ;;  %v923_v10 = vmax.f32 %v921_v8, %v922_v6  ;;  %v1346_v0 = vpop.permute.xlu1 %1345 }
 0x257   :  { %v2525_v11 = vpop.f32.mrb[4].mxu0 }
 0x258   :  { %v917_v13 = vrot.slane %v916_v9, 2  ;;  %v924_v14 = vrot.slane %v923_v10, 4  ;;  %v931_v15 = vsel %vm911_vm5, %v2525_v11, -inf  ;;  %v789_v16 = vpop.f32.mrb[5].mxu0 }
 0x259   :  { %v930_v18 = vsel %vm911_vm5, %v789_v16, -inf }
 0x25a   :  { %v918_v19 = vmax.f32 %v916_v9, %v917_v13  ;;  %v925_v20 = vmax.f32 %v923_v10, %v924_v14  ;;  %v932_v21 = vmax.f32 %v930_v18, %v931_v15  ;;  %v1450_v18 = vpop.trf.xlu0 }
 0x25c   :  { %v919_v22 = vrot.slane %v918_v19, 1  ;;  %v926_v23 = vrot.slane %v925_v20, 2  ;;  %v933_v24 = vrot.slane %v932_v21, 4 }
 0x25e   :  { %v920_v25 = vmax.f32 %v918_v19, %v919_v22  ;;  %v927_v27 = vmax.f32 %v925_v20, %v926_v23  ;;  %v934_v28 = vmax.f32 %v932_v21, %v933_v24  ;;  %v1588_v21 = vpop.permute.xlu1 %1587 }
 0x25f   :  { %v2530_v29 = vpop.f32.mrb[6].mxu0 }
 0x260   :  { %v948_v30 = vsub.f32 %v563_v62, %v920_v25  ;;  %v949_v26 = vsub.f32 %v2515_v59, %v920_v25  ;;  %v928_v31 = vrot.slane %v927_v27, 1  ;;  %v935_v5 = vrot.slane %v934_v28, 2  ;;  %v902_v32 = vpop.f32.mrb[7].mxu0 }
 0x261   :  { %v940_v33 = vsel %vm911_vm5, %v2530_v29, -inf  ;;  %v939_v41 = vsel %vm911_vm5, %v902_v32, -inf }
 0x262   :  { %v956_v55 = vmul.f32 1.442695, %v948_v30  ;;  %v958_v61 = vmul.f32 1.442695, %v949_v26  ;;  %v929_v2 = vmax.f32 %v927_v27, %v928_v31  ;;  %v936_v1 = vmax.f32 %v934_v28, %v935_v5  ;;  %v1570_v28 = vpop.trf.xlu0 }
 0x263   :  { %v941_v12 = vmax.f32 %v939_v41, %v940_v33 }
 0x264   :  { %2687 = vpow2.f32 %v956_v55  ;;  %v950_v17 = vsub.f32 %v676_v7, %v929_v2  ;;  %v951_v34 = vsub.f32 %v2520_v3, %v929_v2  ;;  %v937_v37 = vrot.slane %v936_v1, 1 }
 0x265   :  { %2689 = vpow2.f32 %v958_v61  ;;  %v942_v40 = vrot.slane %v941_v12, 4 }
 0x266   :  { %v960_v42 = vmul.f32 1.442695, %v950_v17  ;;  %v962_v35 = vmul.f32 1.442695, %v951_v34  ;;  %v938_v43 = vmax.f32 %v936_v1, %v937_v37 }
 0x267   :  { %v943_v44 = vmax.f32 %v941_v12, %v942_v40 }
 0x268   :  { %2691 = vpow2.f32 %v960_v42  ;;  %v952_v45 = vsub.f32 %v789_v16, %v938_v43  ;;  %v953_v38 = vsub.f32 %v2525_v11, %v938_v43 }
 0x269   :  { %2693 = vpow2.f32 %v962_v35  ;;  %v944_v46 = vrot.slane %v943_v44, 2 }
 0x26a   :  { %v964_v48 = vmul.f32 1.442695, %v952_v45  ;;  %v966_v49 = vmul.f32 1.442695, %v953_v38 }
 0x26b   :  { %v945_v50 = vmax.f32 %v943_v44, %v944_v46 }
 0x26c   :  { %2695 = vpow2.f32 %v964_v48 }
 0x26d   :  { %2697 = vpow2.f32 %v966_v49  ;;  %v946_v52 = vrot.slane %v945_v50, 1 }
 0x26e   :  { %v2688_v54 = vpop.eup %2687 }
 0x26f   :  { %v2690_v59 = vpop.eup %2689  ;;  %v972_v62 = vsel %vm911_vm5, %v2688_v54, 0.0  ;;  %v947_v63 = vmax.f32 %v945_v50, %v946_v52 }
 0x270   :  { %v973_v3 = vsel %vm911_vm5, %v2690_v59, 0.0  ;;  %v2638_v4 = vpack.c.bf16 %v2690_v59, %v2688_v54 }
 0x271   :  { %v3112_v6 = vadd.f32 %v973_v3, %v972_v62  ;;  %v954_v7 = vsub.f32 %v902_v32, %v947_v63  ;;  %v955_v8 = vsub.f32 %v2530_v29, %v947_v63 }
 0x272   :  { %v2692_v9 = vpop.eup %2691  ;;  %2639 = vmatpush3.bf16.msra.mxu0 %v2638_v4 }
 0x273   :  { %v2694_v10 = vpop.eup %2693  ;;  %v981_v11 = vsel %vm911_vm5, %v2692_v9, 0.0  ;;  %v968_v13 = vmul.f32 1.442695, %v954_v7  ;;  %v970_v14 = vmul.f32 1.442695, %v955_v8  ;;  %2643 = vmatprep.subr.bf16.mxu0 %v2737_v57 }
 0x274   :  { %v982_v15 = vsel %vm911_vm5, %v2694_v10, 0.0  ;;  %v2641_v16 = vpack.c.bf16 %v2694_v10, %v2692_v9 }
 0x275   :  { %v983_v19 = vadd.f32 %v982_v15, %v981_v11  ;;  %2699 = vpow2.f32 %v968_v13  ;;  %2536 = vmatmul.mubr.msk.f32.vlgmr.msra.gmra.mrb[8].mxu0 %vm911_vm5, %v3078_v51  ;;  %v1328_v51 = vpop.trf.xlu1 }
 0x276   :  { %v2696_v20 = vpop.eup %2695  ;;  %2701 = vpow2.f32 %v970_v14  ;;  %2642 = vmatpush3.bf16.msra.mxu1 %v2641_v16  ;;  %2549 = vmatprep.mubr.msk.f32.mxu0 %vm2738_vm4, %v2739_v58 }
 0x277   :  { %v2698_v22 = vpop.eup %2697  ;;  %v990_v23 = vsel %vm911_vm5, %v2696_v20, 0.0  ;;  %2646 = vmatprep.subr.bf16.mxu1 %v2737_v57  ;;  %v984_v55 = vrot.slane %v983_v19, 4 }
 0x278   :  { %v991_v24 = vsel %vm911_vm5, %v2698_v22, 0.0  ;;  %v2644_v25 = vpack.c.bf16 %v2698_v22, %v2696_v20 }
 0x279   :  { %v992_v27 = vadd.f32 %v991_v24, %v990_v23  ;;  %2543 = vmatmul.mubr.msk.f32.vlgmr.msra.gmra.mrb[12].mxu1 %vm911_vm5, %v3076_v36  ;;  %v1329_v26 = vpop.trf.xlu1  ;;  %v1571_v36 = vpop.trf.xlu0  ;;  %v985_v12 = vadd.f32 %v984_v55, %v983_v19 }
 0x27a   :  { %2645 = vmatpush3.bf16.msra.mxu0 %v2644_v25  ;;  %2556 = vmatprep.mubr.msk.f32.mxu1 %vm2738_vm4, %v2739_v58 }
 0x27b   :  { %2559 = vmatprep.subr.mxu0 %v1346_v0  ;;  %v993_v2 = vrot.slane %v992_v27, 4  ;;  %v986_v34 = vrot.slane %v985_v12, 2 }
 0x27d   :  { %2550 = vmatmul.mubr.msk.f32.vlgmr.msra.gmra.mrb[10].mxu0 %vm911_vm5, %v3084_v53  ;;  %v1691_v53 = vpop.trf.xlu0  ;;  %v994_v37 = vadd.f32 %v993_v2, %v992_v27  ;;  %v987_v40 = vadd.f32 %v986_v34, %v985_v12 }
 0x27e   :  { %2560 = vmatpush3.msra.mxu0 %v1346_v0  ;;  %2561 = vmatprep.mubr.msk.f32.mxu0 %vm490_vm3, %v1328_v51 }
 0x27f   :  { %v2700_v29 = vpop.eup %2699  ;;  %2569 = vmatprep.subr.mxu0 %v1588_v21  ;;  %v995_v42 = vrot.slane %v994_v37, 2  ;;  %v988_v44 = vrot.slane %v987_v40, 1 }
 0x280   :  { %v2702_v30 = vpop.eup %2701  ;;  %v999_v31 = vsel %vm911_vm5, %v2700_v29, 0.0 }
 0x281   :  { %v1000_v5 = vsel %vm911_vm5, %v2702_v30, 0.0  ;;  %2562 = vmatmul.mubr.msk.f32.vlgmr.msra.gmra.mrb[12].mxu0 %vm490_vm3, %v1329_v26  ;;  %v2647_v32 = vpack.c.bf16 %v2702_v30, %v2700_v29  ;;  %v1692_v41 = vpop.trf.xlu0  ;;  %v996_v45 = vadd.f32 %v995_v42, %v994_v37  ;;  %v989_v46 = vadd.f32 %v988_v44, %v987_v40 }
 0x282   :  { %v1001_v33 = vadd.f32 %v1000_v5, %v999_v31  ;;  %2570 = vmatpush3.msra.mxu0 %v1588_v21  ;;  %2571 = vmatprep.mubr.msk.f32.mxu0 %vm490_vm3, %v1570_v28 }
 0x283   :  { %2648 = vmatpush3.bf16.msra.mxu1 %v2647_v32  ;;  %2649 = vmatprep.subr.bf16.mxu0 %v2737_v57  ;;  %v997_v48 = vrot.slane %v996_v45, 1 }
 0x284   :  { %2564 = vmatprep.subr.mxu1 %v3106_v39  ;;  %v1002_v35 = vrot.slane %v1001_v33, 4 }
 0x285   :  { %2572 = vmatmul.mubr.msk.f32.vlgmr.msra.gmra.mrb[14].mxu0 %vm490_vm3, %v1571_v36 }
 0x286   :  { %2557 = vmatmul.mubr.msk.f32.vlgmr.msra.gmra.mrb[14].mxu1 %vm911_vm5, %v3088_v56  ;;  %2583 = vmatprep.mubr.msk.f32.mxu0 %vm2738_vm4, %v2739_v58  ;;  %v975_v56 = vrot.slane %v3112_v6, 4  ;;  %v1003_v38 = vadd.f32 %v1002_v35, %v1001_v33 }
 0x287   :  { %2565 = vmatpush3.msra.mxu1 %v3106_v39  ;;  %2566 = vmatprep.mubr.msk.f32.mxu1 %vm490_vm3, %v1449_v60 }
 0x288   :  { %2574 = vmatprep.subr.mxu1 %v3108_v47  ;;  %v976_v61 = vadd.f32 %v975_v56, %v3112_v6  ;;  %v1004_v49 = vrot.slane %v1003_v38, 2 }
 0x28a   :  { %2567 = vmatmul.mubr.msk.f32.vlgmr.msra.gmra.mrb[16].mxu1 %vm490_vm3, %v1450_v18  ;;  %v977_v1 = vrot.slane %v976_v61, 2  ;;  %v1005_v50 = vadd.f32 %v1004_v49, %v1003_v38 }
 0x28b   :  { %2575 = vmatpush3.msra.mxu1 %v3108_v47  ;;  %2576 = vmatprep.mubr.msk.f32.mxu1 %vm490_vm3, %v1691_v53  ;;  %v998_v47 = vadd.f32 %v997_v48, %v996_v45 }
 0x28c   :  { %2652 = vmatprep.subr.bf16.mxu1 %v2737_v57  ;;  %v978_v17 = vadd.f32 %v977_v1, %v976_v61  ;;  %v1006_v52 = vrot.slane %v1005_v50, 1 }
 0x28e   :  { %2577 = vmatmul.mubr.msk.f32.vlgmr.msra.gmra.mrb[18].mxu1 %vm490_vm3, %v1692_v41  ;;  %v979_v39 = vrot.slane %v978_v17, 1  ;;  %v1007_v63 = vadd.f32 %v1006_v52, %v1005_v50 }
 0x28f   :  { %2590 = vmatprep.mubr.msk.f32.mxu1 %vm2738_vm4, %v2739_v58 }
 0x290   :  { %v980_v43 = vadd.f32 %v979_v39, %v978_v17 }
 0x292   :  { %2703 = vrcp.f32 %v980_v43 }
 0x293   :  { %2705 = vrcp.f32 %v989_v46 }
 0x294   :  { %2707 = vrcp.f32 %v998_v47 }
 0x295   :  { %2709 = vrcp.f32 %v1007_v63 }
 0x29c   :  { %v2704_v54 = vpop.eup %2703 }
 0x29d   :  { %v2706_v0 = vpop.eup %2705 }
 0x29e   :  { %v2708_v7 = vpop.eup %2707 }
 0x29f   :  { %v2710_v19 = vpop.eup %2709 }
 0x348   :  { %v1077_v59 = vpop.f32.mrb[8].mxu0 }
 0x349   :  { %v3154_v60 = vmul.f32 %v2704_v54, %v1077_v59  ;;  %v2537_v62 = vpop.f32.mrb[9].mxu0 }
 0x34c   :  { %v1150_v3 = vpop.f32.mrb[12].mxu1 }
 0x34d   :  { %v3156_v4 = vmul.f32 %v2706_v0, %v1150_v3  ;;  %v2544_v6 = vpop.f32.mrb[13].mxu1 }
 0x350   :  { %v1223_v8 = vpop.f32.mrb[10].mxu0 }
 0x351   :  { %v3158_v9 = vmul.f32 %v2708_v7, %v1223_v8  ;;  %v2551_v10 = vpop.f32.mrb[11].mxu0 }
 0x354   :  { %v2563_v11 = vpop.f32.mrb[12].mxu0 }
 0x355   :  { %v1793_v13 = vsel %vm911_vm5, %v2563_v11, -inf  ;;  %v1420_v14 = vpop.f32.mrb[13].mxu0 }
 0x356   :  { %v1792_v15 = vsel %vm911_vm5, %v1420_v14, -inf }
 0x357   :  { %v1794_v16 = vmax.f32 %v1792_v15, %v1793_v13 }
 0x358   :  { %v2573_v18 = vpop.f32.mrb[14].mxu0 }
 0x359   :  { %v1795_v20 = vrot.slane %v1794_v16, 4  ;;  %v1296_v21 = vpop.f32.mrb[14].mxu1  ;;  %v1811_v22 = vsel %vm911_vm5, %v2573_v18, -inf  ;;  %v1662_v23 = vpop.f32.mrb[15].mxu0 }
 0x35a   :  { %v3163_v24 = vmul.f32 %v2710_v19, %v1296_v21  ;;  %v2558_v25 = vpop.f32.mrb[15].mxu1  ;;  %v1810_v27 = vsel %vm911_vm5, %v1662_v23, -inf }
 0x35b   :  { %v1796_v51 = vmax.f32 %v1794_v16, %v1795_v20  ;;  %v1812_v28 = vmax.f32 %v1810_v27, %v1811_v22  ;;  %v1889_v27 = vpop.permute.xlu1 %1888 }
 0x35d   :  { %v1797_v29 = vrot.slane %v1796_v51, 2  ;;  %v1813_v30 = vrot.slane %v1812_v28, 4  ;;  %v2568_v26 = vpop.f32.mrb[16].mxu1 }
 0x35e   :  { %v1802_v31 = vsel %vm911_vm5, %v2568_v26, -inf  ;;  %v1541_v36 = vpop.f32.mrb[17].mxu1 }
 0x35f   :  { %v1798_v5 = vmax.f32 %v1796_v51, %v1797_v29  ;;  %v1814_v32 = vmax.f32 %v1812_v28, %v1813_v30  ;;  %v1801_v33 = vsel %vm911_vm5, %v1541_v36, -inf }
 0x360   :  { %v1803_v53 = vmax.f32 %v1801_v33, %v1802_v31 }
 0x361   :  { %v1799_v41 = vrot.slane %v1798_v5, 1  ;;  %v1815_v56 = vrot.slane %v1814_v32, 2  ;;  %v2578_v55 = vpop.f32.mrb[18].mxu1 }
 0x362   :  { %v1804_v61 = vrot.slane %v1803_v53, 4  ;;  %v1820_v2 = vsel %vm911_vm5, %v2578_v55, -inf  ;;  %v1783_v1 = vpop.f32.mrb[19].mxu1 }
 0x363   :  { %v1800_v12 = vmax.f32 %v1798_v5, %v1799_v41  ;;  %v1816_v17 = vmax.f32 %v1814_v32, %v1815_v56  ;;  %v1819_v34 = vsel %vm911_vm5, %v1783_v1, -inf  ;;  %v2037_v5 = vpop.permute.xlu1 %2036 }
 0x364   :  { %v1805_v37 = vmax.f32 %v1803_v53, %v1804_v61  ;;  %v1821_v39 = vmax.f32 %v1819_v34, %v1820_v2  ;;  %v1963_v2 = vpop.permute.xlu0 %1962 }
 0x365   :  { %v1828_v40 = vsub.f32 %v1420_v14, %v1800_v12  ;;  %v1829_v42 = vsub.f32 %v2563_v11, %v1800_v12  ;;  %v1817_v35 = vrot.slane %v1816_v17, 1 }
 0x366   :  { %v1806_v43 = vrot.slane %v1805_v37, 2  ;;  %v1822_v44 = vrot.slane %v1821_v39, 4 }
 0x367   :  { %v1836_v45 = vmul.f32 1.442695, %v1828_v40  ;;  %v1838_v38 = vmul.f32 1.442695, %v1829_v42  ;;  %v1818_v46 = vmax.f32 %v1816_v17, %v1817_v35  ;;  %v2111_v34 = vpop.permute.xlu1 %2110 }
 0x368   :  { %v1807_v48 = vmax.f32 %v1805_v37, %v1806_v43  ;;  %v1823_v49 = vmax.f32 %v1821_v39, %v1822_v44 }
 0x369   :  { %2711 = vpow2.f32 %v1836_v45  ;;  %v1832_v47 = vsub.f32 %v1662_v23, %v1818_v46  ;;  %v1833_v50 = vsub.f32 %v2573_v18, %v1818_v46 }
 0x36a   :  { %2713 = vpow2.f32 %v1838_v38  ;;  %v1808_v52 = vrot.slane %v1807_v48, 1  ;;  %v1824_v54 = vrot.slane %v1823_v49, 2 }
 0x36b   :  { %v1844_v59 = vmul.f32 1.442695, %v1832_v47  ;;  %v1846_v62 = vmul.f32 1.442695, %v1833_v50 }
 0x36c   :  { %v1809_v63 = vmax.f32 %v1807_v48, %v1808_v52  ;;  %v1825_v0 = vmax.f32 %v1823_v49, %v1824_v54 }
 0x36d   :  { %2715 = vpow2.f32 %v1844_v59 }
 0x36e   :  { %2717 = vpow2.f32 %v1846_v62  ;;  %v1830_v3 = vsub.f32 %v1541_v36, %v1809_v63  ;;  %v1831_v6 = vsub.f32 %v2568_v26, %v1809_v63  ;;  %v1826_v7 = vrot.slane %v1825_v0, 1 }
 0x370   :  { %v1840_v8 = vmul.f32 1.442695, %v1830_v3  ;;  %v1842_v10 = vmul.f32 1.442695, %v1831_v6  ;;  %v1827_v11 = vmax.f32 %v1825_v0, %v1826_v7 }
 0x372   :  { %2719 = vpow2.f32 %v1840_v8  ;;  %v1834_v13 = vsub.f32 %v1783_v1, %v1827_v11  ;;  %v1835_v14 = vsub.f32 %v2578_v55, %v1827_v11 }
 0x373   :  { %v2712_v15 = vpop.eup %2711  ;;  %2721 = vpow2.f32 %v1842_v10 }
 0x374   :  { %v2714_v16 = vpop.eup %2713  ;;  %v1852_v18 = vsel %vm911_vm5, %v2712_v15, 0.0  ;;  %v1848_v19 = vmul.f32 1.442695, %v1834_v13  ;;  %v1850_v20 = vmul.f32 1.442695, %v1835_v14 }
 0x375   :  { %v1853_v21 = vsel %vm911_vm5, %v2714_v16, 0.0  ;;  %v2650_v22 = vpack.c.bf16 %v2714_v16, %v2712_v15 }
 0x376   :  { %v1854_v23 = vadd.f32 %v1853_v21, %v1852_v18  ;;  %2723 = vpow2.f32 %v1848_v19 }
 0x377   :  { %v2716_v25 = vpop.eup %2715  ;;  %2725 = vpow2.f32 %v1850_v20  ;;  %2651 = vmatpush3.bf16.msra.mxu0 %v2650_v22 }
 0x378   :  { %v2718_v51 = vpop.eup %2717  ;;  %v1870_v28 = vsel %vm911_vm5, %v2716_v25, 0.0  ;;  %2655 = vmatprep.subr.bf16.mxu0 %v2737_v57  ;;  %v1855_v37 = vrot.slane %v1854_v23, 4 }
 0x379   :  { %v1871_v29 = vsel %vm911_vm5, %v2718_v51, 0.0  ;;  %v2656_v30 = vpack.c.bf16 %v2718_v51, %v2716_v25 }
 0x37a   :  { %v1872_v26 = vadd.f32 %v1871_v29, %v1870_v28  ;;  %2584 = vmatmul.mubr.msk.f32.vlgmr.msra.gmra.mrb[16].mxu0 %vm911_vm5, %v1889_v27  ;;  %v1856_v40 = vadd.f32 %v1855_v37, %v1854_v23  ;;  %v2212_v23 = vld [vmem:[%s3248_s6] sm:$0xff] }
 0x37b   :  { %2657 = vmatpush3.bf16.msra.mxu0 %v2656_v30  ;;  %2597 = vmatprep.mubr.msk.f32.mxu0 %vm2738_vm4, %v2739_v58  ;;  %v2216_v29 = vld [vmem:[%s3249_s7] sm:$0xff] }
 0x37c   :  { %v2720_v31 = vpop.eup %2719  ;;  %v1873_v39 = vrot.slane %v1872_v26, 4  ;;  %v1857_v42 = vrot.slane %v1856_v40, 2 }
 0x37d   :  { %v2722_v36 = vpop.eup %2721  ;;  %v1861_v32 = vsel %vm911_vm5, %v2720_v31, 0.0 }
 0x37e   :  { %v1862_v33 = vsel %vm911_vm5, %v2722_v36, 0.0  ;;  %2598 = vmatmul.mubr.msk.f32.vlgmr.msra.gmra.mrb[18].mxu0 %vm911_vm5, %v2037_v5  ;;  %v2653_v53 = vpack.c.bf16 %v2722_v36, %v2720_v31  ;;  %v1874_v35 = vadd.f32 %v1873_v39, %v1872_v26  ;;  %v1858_v43 = vadd.f32 %v1857_v42, %v1856_v40  ;;  %v2218_v26 = vld [vmem:[%s3249_s7 + $0x10] sm:$0xff]  ;;  %v2217_v31 = vld [vmem:[%s3249_s7 + $0x8] sm:$0xff]  ;;  %v2219_v36 = vld [vmem:[%s3249_s7 + $0x18] sm:$0xff] }
 0x37f   :  { %v1863_v41 = vadd.f32 %v1862_v33, %v1861_v32  ;;  %2615 = vmatprep.mubr.msk.f32.mxu0 %vm71_vm0, %v2212_v23 }
 0x380   :  { %v2724_v56 = vpop.eup %2723  ;;  %2654 = vmatpush3.bf16.msra.mxu1 %v2653_v53  ;;  %v1875_v44 = vrot.slane %v1874_v35, 2  ;;  %v1859_v46 = vrot.slane %v1858_v43, 1 }
 0x381   :  { %v2726_v55 = vpop.eup %2725  ;;  %v1879_v61 = vsel %vm911_vm5, %v2724_v56, 0.0  ;;  %2658 = vmatprep.subr.bf16.mxu1 %v2737_v57  ;;  %v1864_v57 = vrot.slane %v1863_v41, 4 }
 0x382   :  { %v1880_v1 = vsel %vm911_vm5, %v2726_v55, 0.0  ;;  %v2659_v12 = vpack.c.bf16 %v2726_v55, %v2724_v56  ;;  %v1876_v48 = vadd.f32 %v1875_v44, %v1874_v35  ;;  %v1860_v50 = vadd.f32 %v1859_v46, %v1858_v43 }
 0x383   :  { %v1881_v17 = vadd.f32 %v1880_v1, %v1879_v61  ;;  %2591 = vmatmul.mubr.msk.f32.vlgmr.msra.gmra.mrb[20].mxu1 %vm911_vm5, %v1963_v2  ;;  %v1865_v38 = vadd.f32 %v1864_v57, %v1863_v41 }
 0x384   :  { %2660 = vmatpush3.bf16.msra.mxu1 %v2659_v12  ;;  %2604 = vmatprep.mubr.msk.f32.mxu1 %vm2738_vm4, %v2739_v58  ;;  %v1877_v52 = vrot.slane %v1876_v48, 1  ;;  %2727 = vrcp.f32 %v1860_v50 }
 0x385   :  { %v1882_v45 = vrot.slane %v1881_v17, 4  ;;  %v1866_v49 = vrot.slane %v1865_v38, 2 }
 0x386   :  { %v1878_v59 = vadd.f32 %v1877_v52, %v1876_v48 }
 0x387   :  { %2605 = vmatmul.mubr.msk.f32.vlgmr.msra.gmra.mrb[22].mxu1 %vm911_vm5, %v2111_v34  ;;  %v1883_v47 = vadd.f32 %v1882_v45, %v1881_v17  ;;  %v1867_v58 = vadd.f32 %v1866_v49, %v1865_v38 }
 0x388   :  { %2729 = vrcp.f32 %v1878_v59 }
 0x389   :  { %v1884_v54 = vrot.slane %v1883_v47, 2  ;;  %v1868_v62 = vrot.slane %v1867_v58, 1 }
 0x38b   :  { %v1885_v63 = vadd.f32 %v1884_v54, %v1883_v47  ;;  %v1869_v0 = vadd.f32 %v1868_v62, %v1867_v58 }
 0x38d   :  { %v1886_v3 = vrot.slane %v1885_v63, 1  ;;  %2731 = vrcp.f32 %v1869_v0 }
 0x38e   :  { %v2728_v7 = vpop.eup %2727 }
 0x38f   :  { %v1887_v6 = vadd.f32 %v1886_v3, %v1885_v63 }
 0x391   :  { %2733 = vrcp.f32 %v1887_v6 }
 0x392   :  { %v2730_v13 = vpop.eup %2729 }
 0x397   :  { %v2732_v18 = vpop.eup %2731 }
 0x39b   :  { %v2734_v25 = vpop.eup %2733 }
 0x44d   :  { %v1958_v8 = vpop.f32.mrb[16].mxu0 }
 0x44e   :  { %v2188_v10 = vmul.f32 %v2728_v7, %v1958_v8  ;;  %v2585_v11 = vpop.f32.mrb[17].mxu0 }
 0x451   :  { %v2106_v14 = vpop.f32.mrb[18].mxu0 }
 0x452   :  { %v2190_v15 = vmul.f32 %v2730_v13, %v2106_v14  ;;  %v2599_v16 = vpop.f32.mrb[19].mxu0 }
 0x456   :  { %v2032_v19 = vpop.f32.mrb[20].mxu1 }
 0x457   :  { %v2189_v20 = vmul.f32 %v2732_v18, %v2032_v19  ;;  %v2592_v21 = vpop.f32.mrb[21].mxu1 }
 0x459   :  { %v2677_v22 = vpack.i.bf16 %v2189_v20, %v2188_v10 }
 0x45a   :  { %v2180_v27 = vpop.f32.mrb[22].mxu1 }
 0x45b   :  { %v2191_v51 = vmul.f32 %v2734_v25, %v2180_v27  ;;  %2678 = vrot.lane.b32.xlu1 %v2677_v22, %s2740_s27  ;;  %v2606_v28 = vpop.f32.mrb[23].mxu1 }
 0x45d   :  { %v2682_v30 = vpack.i.bf16 %v2191_v51, %v2190_v15 }
 0x45f   :  { %2222 = vperm.xlu1 %2676, %v2216_v29   ;;  %2683 = vrot.lane.b32.xlu0 %v2682_v30, %s2740_s27 }
 0x463   :  { %2232 = vperm.xlu1 %2676, %v2218_v26   ;;  %2227 = vperm.xlu0 %2675, %v2217_v31  }
 0x467   :  { %2237 = vperm.xlu0 %2675, %v2219_v36  }
 0x4cd   :  { %v2679_v5 = vpop.permute.xlu1 %2678 }
 0x4ce   :  { %v2681_v32 = vunpack.i.h.bf16 %v2679_v5  ;;  %v2680_v33 = vunpack.i.l.bf16 %v2679_v5 }
 0x4d0   :  { %v2208_v53 = vsel %vm911_vm5, %v3154_v60, %v2680_v33  ;;  %v2209_v41 = vsel %vm911_vm5, %v3156_v4, %v2681_v32  ;;  %v2213_v60 = vld [vmem:[%s3248_s6 + $0x8] sm:$0xff]  ;;  %v2214_v4 = vld [vmem:[%s3248_s6 + $0x10] sm:$0xff] }
 0x4d1   :  { %v2684_v56 = vpop.permute.xlu0 %2683  ;;  %v2661_v55 = vpack.c.bf16 %v2209_v41, %v2208_v53 }
 0x4d2   :  { %v2686_v61 = vunpack.i.h.bf16 %v2684_v56  ;;  %v2685_v2 = vunpack.i.l.bf16 %v2684_v56 }
 0x4d3   :  { %2662 = vmatprep.subr.bf16.mxu0 %v2661_v55 }
 0x4d4   :  { %2664 = vmatpush3.bf16.msra.mxu0 %v2661_v55  ;;  %v2210_v1 = vsel %vm911_vm5, %v3158_v9, %v2685_v2  ;;  %v2211_v12 = vsel %vm911_vm5, %v3163_v24, %v2686_v61  ;;  %v2215_v9 = vld [vmem:[%s3248_s6 + $0x18] sm:$0xff] }
 0x4d5   :  { %v2665_v17 = vpack.c.bf16 %v2211_v12, %v2210_v1 }
 0x4d7   :  { %2666 = vmatprep.subr.bf16.mxu0 %v2665_v17 }
 0x4d8   :  { %2668 = vmatpush3.bf16.msra.mxu0 %v2665_v17 }
 0x4db   :  { %2616 = vmatmul.mubr.msk.f32.vlgmr.msra.gmra.mrb[20].mxu0 %vm71_vm0, %v2213_v60 }
 0x4dc   :  { %2618 = vmatprep.mubr.msk.f32.mxu0 %vm71_vm0, %v2214_v4 }
 0x4de   :  { %v2223_v34 = vpop.permute.xlu1 %2222 }
 0x4df   :  { %2619 = vmatmul.mubr.msk.f32.gmra.mrb[22].mxu0 %vm71_vm0, %v2215_v9 }
 0x4e2   :  { %v2228_v24 = vpop.permute.xlu0 %2227  ;;  %v2233_v43 = vpop.permute.xlu1 %2232 }
 0x4e6   :  { %v2238_v35 = vpop.permute.xlu0 %2237 }
 0x5ae   :  { %v2617_v37 = vpop.f32.mrb[20].mxu0 }
 0x5af   :  { %v2324_v39 = vadd.f32 %v2617_v37, %v2228_v24  ;;  %v2318_v40 = vpop.f32.mrb[21].mxu0 }
 0x5b0   :  { %v2319_v42 = vadd.f32 %v2318_v40, %v2223_v34 }
 0x5b1   :  { %2338 = vst.msk [vmem:[%s3250_s10 + $0x8] sm:$0xff] %vm71_vm0, %v2324_v39 }
 0x5b2   :  { %2337 = vst.msk [vmem:[%s3250_s10] sm:$0xff] %vm71_vm0, %v2319_v42  ;;  %v2620_v57 = vpop.f32.mrb[22].mxu0 }
 0x5b3   :  { %v2334_v44 = vadd.f32 %v2620_v57, %v2238_v35  ;;  %v2328_v45 = vpop.f32.mrb[23].mxu0 }
 0x5b4   :  { %v2329_v38 = vadd.f32 %v2328_v45, %v2233_v43 }
 0x5b5   :  { %2340 = vst.msk [vmem:[%s3250_s10 + $0x18] sm:$0xff] %vm71_vm0, %v2334_v44 }
 0x5b6   :  { %2339 = vst.msk [vmem:[%s3250_s10 + $0x10] sm:$0xff] %vm71_vm0, %v2329_v38 }

</bundles_post_ra>
